<compile_context>
chip_gen: v7x
topology: tpu7x:2x2x1
jax: 0.10.0
libtpu: 0.0.40
codegen_flags: <defaults>
</compile_context>

<pallas_src>
import functools

import jax
import jax.numpy as jnp
from jax.experimental import pallas as pl
from jax.experimental.pallas import tpu as pltpu


def _interp_matrix(n_in, n_out):
    """Dense (n_out, n_in) matrix A s.t. A @ v == F.interpolate(v, scale=n_out/n_in,
    mode='bilinear', align_corners=False) along one spatial axis."""
    o = jnp.arange(n_out, dtype=jnp.float32)
    src = jnp.maximum((o + 0.5) * (n_in / n_out) - 0.5, 0.0)
    i0 = jnp.clip(jnp.floor(src).astype(jnp.int32), 0, n_in - 1)
    i1 = jnp.minimum(i0 + 1, n_in - 1)
    w1 = src - i0.astype(jnp.float32)
    w0 = 1.0 - w1
    rows = jnp.arange(n_out, dtype=jnp.int32)
    a = jnp.zeros((n_out, n_in), jnp.float32)
    a = a.at[rows, i0].add(w0)
    a = a.at[rows, i1].add(w1)
    return a


def _banded_conv_weights(w_taps, width, scale):
    """w_taps: (3, 3, Cin, Cout) conv weight indexed (dy, dx, ci, co).

    Returns a (3, width*Cin, width*Cout) stack of dense banded matrices: B[dy] maps a
    lane-dense input row (layout w*Cin + ci) to a lane-dense output row (layout w*Cout + co),
    with the dx shift, the zero column boundary (padding=1) and the folded BN scale baked in:
        B[dy][wi*Cin + ci, wo*Cout + co] = w[dy, wi-wo+1, ci, co] * scale[co]   if |wi-wo| <= 1.
    """
    kh, kw, cin, cout = w_taps.shape
    ws = w_taps * scale.reshape(1, 1, 1, cout)                    # fold BN scale into weights
    wi = jnp.arange(width)[:, None]                               # input column
    wo = jnp.arange(width)[None, :]                               # output column
    bands = []
    for dy in range(kh):
        b = jnp.zeros((width, cin, width, cout), jnp.float32)
        for dx in range(kw):
            mask = (wi == wo + dx - 1).astype(jnp.float32)        # (width, width) band
            b = b + mask[:, None, :, None] * ws[dy, dx][None, :, None, :]
        bands.append(b.reshape(width * cin, width * cout))
    return jnp.stack(bands, axis=0)


def _kernel(skip_ref, x_ref, ah_ref, mr_ref, bu_ref,
            b1_ref, c1_ref, b2_ref, c2_ref,
            out_ref,
            cat_scr, mid_scr,
            *, H2, W2, Cs, Co):
    f32 = jnp.float32
    bf16 = jnp.bfloat16
    WCs = W2 * Cs
    WCo = W2 * Co

    # ---- InterpConv: bilinear 2x upsample + 1x1 conv (BN scale pre-folded into mr) as two
    #      lane-dense matmuls; bias + ReLU epilogue in f32.
    t = jnp.dot(ah_ref[...], x_ref[0], preferred_element_type=f32)            # (H2, W*Cin)
    up = jnp.dot(t.astype(bf16), mr_ref[...], preferred_element_type=f32)     # (H2, W2*Cs)
    up = jnp.maximum(up + bu_ref[...], 0.0)

    # ---- cat([skip, up], channel): realised as a [skip-block | up-block] lane layout in a
    #      2-D lane-dense, row-padded scratch (column zero-padding is baked into the banded
    #      weights, so only the top/bottom halo rows need zeroing; done every step so it is
    #      correct when the "parallel" batch axis is split across TensorCores).
    cat_scr[0:1, :] = jnp.zeros((1, 2 * WCs), f32)
    cat_scr[H2 + 1:H2 + 2, :] = jnp.zeros((1, 2 * WCs), f32)
    cat_scr[1:1 + H2, :] = jnp.concatenate([skip_ref[0].astype(f32), up], axis=1)

    # ---- conv_block conv #1: 3x3 (2*Cs -> Co) as 3 banded lane-dense matmuls, K=2*W2*Cs,
    #      N=W2*Co; accumulator initialized from the first tap (no zeros+add).
    acc = jnp.dot(cat_scr[0:H2, :].astype(bf16), b1_ref[0], preferred_element_type=f32)
    acc += jnp.dot(cat_scr[1:1 + H2, :].astype(bf16), b1_ref[1], preferred_element_type=f32)
    acc += jnp.dot(cat_scr[2:2 + H2, :].astype(bf16), b1_ref[2], preferred_element_type=f32)
    mid = jnp.maximum(acc + c1_ref[...], 0.0)                                  # (H2, W2*Co)

    # ---- conv_block conv #2: 3x3 (Co -> Co), same banded structure.
    mid_scr[0:1, :] = jnp.zeros((1, WCo), f32)
    mid_scr[H2 + 1:H2 + 2, :] = jnp.zeros((1, WCo), f32)
    mid_scr[1:1 + H2, :] = mid

    acc2 = jnp.dot(mid_scr[0:H2, :].astype(bf16), b2_ref[0], preferred_element_type=f32)
    acc2 += jnp.dot(mid_scr[1:1 + H2, :].astype(bf16), b2_ref[1], preferred_element_type=f32)
    acc2 += jnp.dot(mid_scr[2:2 + H2, :].astype(bf16), b2_ref[2], preferred_element_type=f32)
    out = jnp.maximum(acc2 + c2_ref[...], 0.0)

    # lane-dense store: minor dim W2*Co is a multiple of 128 -> unmasked vst.
    out_ref[0] = out.astype(out_ref.dtype)


def _make_params(key, cin, cs, co, eps=1e-5):
    """Deterministic synthetic parameters. Conv weights stored as (kh, kw, Cin, Cout);
    BatchNorm (eval mode) folded into per-channel scale/bias."""
    ks = jax.random.split(key, 6)

    def bn_fold(k, c):
        kg, kb, km, kv = jax.random.split(k, 4)
        gamma = 1.0 + 0.1 * jax.random.normal(kg, (c,), jnp.float32)
        beta = 0.1 * jax.random.normal(kb, (c,), jnp.float32)
        mean = 0.1 * jax.random.normal(km, (c,), jnp.float32)
        var = 0.5 + jnp.abs(jax.random.normal(kv, (c,), jnp.float32))
        scale = gamma * jax.lax.rsqrt(var + eps)
        bias = beta - mean * scale
        return scale.reshape(1, c), bias.reshape(1, c)

    wu = 0.1 * jax.random.normal(ks[0], (cin, cs), jnp.float32)           # 1x1 conv, Cin -> Cs
    w1 = 0.1 * jax.random.normal(ks[1], (3, 3, 2 * cs, co), jnp.float32)  # 3x3 conv, 2*Cs -> Co
    w2 = 0.1 * jax.random.normal(ks[2], (3, 3, co, co), jnp.float32)      # 3x3 conv, Co -> Co
    su, bu = bn_fold(ks[3], cs)
    s1, b1 = bn_fold(ks[4], co)
    s2, b2 = bn_fold(ks[5], co)
    return dict(wu=wu, su=su, bu=bu, w1=w1, s1=s1, b1=b1, w2=w2, s2=s2, b2=b2)


def sherlock_up_conv_block(skip_nchw, x_nchw, params):
    skip = jnp.transpose(skip_nchw, (0, 2, 3, 1)).astype(jnp.float32)     # -> NHWC
    x = jnp.transpose(x_nchw, (0, 2, 3, 1)).astype(jnp.float32)
    n, h2, w2, cs = skip.shape
    _, h, w, cin = x.shape
    assert h2 == 2 * h and w2 == 2 * w, "skip must match the 2x-upsampled x"
    # TODO(synk): the F.pad branch for mismatched skip / upsampled-x spatial sizes is not
    # implemented (InterpConv's fixed 2x upsample makes them equal in UNet use).
    co = params["w2"].shape[-1]

    # Fold channels into the lane axis: activations travel as (n, rows, cols*C), bf16 DMA.
    skip2d = skip.reshape(n, h2, w2 * cs).astype(jnp.bfloat16)
    x2d = x.reshape(n, h, w * cin).astype(jnp.bfloat16)

    # Upsample constants: row-interp matrix; column interp + 1x1 conv + BN scale fused
    # host-side into one lane-dense matrix.
    # TODO(synk): kron(A_W^T, W_1x1) and the dense-stored banded conv weights are quadratic
    # in W; for production UNet widths switch to a block-banded / separate-interp form.
    ah = _interp_matrix(h, h2).astype(jnp.bfloat16)                        # (H2, H)
    aw = _interp_matrix(w, w2)                                             # (W2, W)
    m_right = (jnp.kron(aw.T, params["wu"])
               * jnp.tile(params["su"], (1, w2))).astype(jnp.bfloat16)     # (W*Cin, W2*Cs)
    bu_t = jnp.tile(params["bu"], (1, w2))                                 # (1, W2*Cs) f32

    # Banded conv weights (BN scale folded in). conv1 input layout is [skip-block | up-block],
    # so stack the skip-half and up-half of w1 along the K dimension.
    s1 = params["s1"].reshape(-1)
    s2 = params["s2"].reshape(-1)
    band1_skip = _banded_conv_weights(params["w1"][:, :, :cs, :], w2, s1)  # (3, W2*Cs, W2*Co)
    band1_up = _banded_conv_weights(params["w1"][:, :, cs:, :], w2, s1)    # (3, W2*Cs, W2*Co)
    band1 = jnp.concatenate([band1_skip, band1_up], axis=1).astype(jnp.bfloat16)
    band2 = _banded_conv_weights(params["w2"], w2, s2).astype(jnp.bfloat16)  # (3, W2*Co, W2*Co)
    bias1_t = jnp.tile(params["b1"], (1, w2))                              # (1, W2*Co) f32
    bias2_t = jnp.tile(params["b2"], (1, w2))

    kernel = functools.partial(_kernel, H2=h2, W2=w2, Cs=cs, Co=co)

    def const(shape):
        return pl.BlockSpec(shape, lambda i, _s=shape: (0,) * len(_s))

    grid_spec = pltpu.PrefetchScalarGridSpec(
        num_scalar_prefetch=0,
        grid=(n,),                                                         # one batch element / step
        in_specs=[
            pl.BlockSpec((1, h2, w2 * cs), lambda i: (i, 0, 0)),           # skip, lane-dense
            pl.BlockSpec((1, h, w * cin), lambda i: (i, 0, 0)),            # x, lane-dense
            const((h2, h)),                                                # A_H
            const((w * cin, w2 * cs)),                                     # kron(A_W^T, W_1x1)*su
            const((1, w2 * cs)),                                           # upsample BN bias (tiled)
            const((3, 2 * w2 * cs, w2 * co)),                              # banded conv-1 weights
            const((1, w2 * co)),                                           # conv-1 BN bias (tiled)
            const((3, w2 * co, w2 * co)),                                  # banded conv-2 weights
            const((1, w2 * co)),                                           # conv-2 BN bias (tiled)
        ],
        out_specs=pl.BlockSpec((1, h2, w2 * co), lambda i: (i, 0, 0)),     # lane-dense output
        scratch_shapes=[
            pltpu.VMEM((h2 + 2, 2 * w2 * cs), jnp.float32),                # row-padded [skip|up]
            pltpu.VMEM((h2 + 2, w2 * co), jnp.float32),                    # row-padded conv-1 out
        ],
    )
    out = pl.pallas_call(
        kernel,
        out_shape=jax.ShapeDtypeStruct((n, h2, w2 * co), jnp.float32),
        grid_spec=grid_spec,
        compiler_params=pltpu.CompilerParams(
            dimension_semantics=("parallel",),      # batch elements are independent (v7x: 2 TCs)
            vmem_limit_bytes=16 * 1024 * 1024,      # actual footprint ~2 MiB; safe on v7x 64 MiB
        ),
    )(skip2d, x2d, ah, m_right, bu_t, band1, bias1_t, band2, bias2_t)
    out = out.reshape(n, h2, w2, co)
    return jnp.transpose(out, (0, 3, 1, 2))                                # back to NCHW


if __name__ == "__main__":
    N, in_channels, skip_channels, out_channels = 2, 8, 4, 8
    H = W = 16

    key = jax.random.PRNGKey(0)
    k_skip, k_x, k_par = jax.random.split(key, 3)
    skip = jax.random.normal(k_skip, (N, skip_channels, 2 * H, 2 * W), jnp.float32)  # NCHW
    x = jax.random.normal(k_x, (N, in_channels, H, W), jnp.float32)                  # NCHW
    params = _make_params(k_par, in_channels, skip_channels, out_channels)

    out = sherlock_up_conv_block(skip, x, params)
    jax.block_until_ready(out)
    assert out.shape == (N, out_channels, 2 * H, 2 * W), out.shape
    print("KERNEL_OK")
</pallas_src>

<mosaic_0001>
module attributes {stable_mosaic.version = 11 : i64} {
  func.func @_kernel(%arg0: i32, %arg1: memref<1x32x128xbf16, #tpu.memory_space<vmem>>, %arg2: memref<1x16x128xbf16, #tpu.memory_space<vmem>>, %arg3: memref<32x16xbf16, #tpu.memory_space<vmem>>, %arg4: memref<128x128xbf16, #tpu.memory_space<vmem>>, %arg5: memref<1x128xf32, #tpu.memory_space<vmem>>, %arg6: memref<3x256x256xbf16, #tpu.memory_space<vmem>>, %arg7: memref<1x256xf32, #tpu.memory_space<vmem>>, %arg8: memref<3x256x256xbf16, #tpu.memory_space<vmem>>, %arg9: memref<1x256xf32, #tpu.memory_space<vmem>>, %arg10: memref<1x32x256xf32, #tpu.memory_space<vmem>>, %arg11: memref<34x256xf32, #tpu.memory_space<vmem>>, %arg12: memref<34x256xf32, #tpu.memory_space<vmem>>) attributes {dimension_semantics = [#tpu.dimension_semantics<parallel>], iteration_bounds = array<i64: 2>, scalar_prefetch = 0 : i64, scratch_operands = 2 : i64, tpu.core_type = #tpu.core_type<tc>, window_params = [{transform_indices = @transform_0, window_bounds = array<i64: 1, 32, 128>}, {transform_indices = @transform_1, window_bounds = array<i64: 1, 16, 128>}, {pipeline_mode = #tpu.pipeline_mode<synchronous>, transform_indices = @transform_2, window_bounds = array<i64: 32, 16>}, {pipeline_mode = #tpu.pipeline_mode<synchronous>, transform_indices = @transform_3, window_bounds = array<i64: 128, 128>}, {pipeline_mode = #tpu.pipeline_mode<synchronous>, transform_indices = @transform_4, window_bounds = array<i64: 1, 128>}, {pipeline_mode = #tpu.pipeline_mode<synchronous>, transform_indices = @transform_5, window_bounds = array<i64: 3, 256, 256>}, {pipeline_mode = #tpu.pipeline_mode<synchronous>, transform_indices = @transform_6, window_bounds = array<i64: 1, 256>}, {pipeline_mode = #tpu.pipeline_mode<synchronous>, transform_indices = @transform_7, window_bounds = array<i64: 3, 256, 256>}, {pipeline_mode = #tpu.pipeline_mode<synchronous>, transform_indices = @transform_8, window_bounds = array<i64: 1, 256>}, {transform_indices = @transform_9, window_bounds = array<i64: 1, 32, 256>}]} {
    %c0 = arith.constant 0 : index
    %c0_0 = arith.constant 0 : index
    %0 = vector.load %arg3[%c0, %c0_0] : memref<32x16xbf16, #tpu.memory_space<vmem>>, vector<32x16xbf16>
    %c0_1 = arith.constant 0 : index
    %c0_2 = arith.constant 0 : index
    %c0_3 = arith.constant 0 : index
    %1 = vector.load %arg2[%c0_1, %c0_2, %c0_3] : memref<1x16x128xbf16, #tpu.memory_space<vmem>>, vector<1x16x128xbf16>
    %2 = vector.shape_cast %1 : vector<1x16x128xbf16> to vector<16x128xbf16>
    %cst = arith.constant dense<0.000000e+00> : vector<32x128xf32>
    %3 = tpu.matmul %0, %2, %cst {dimension_numbers = #tpu.dot_dimension_numbers<[1], [0], [0], [1], [0, 0, 1, 1], [], []>} : vector<32x16xbf16>, vector<16x128xbf16>, vector<32x128xf32> -> vector<32x128xf32>
    %4 = arith.truncf %3 : vector<32x128xf32> to vector<32x128xbf16>
    %c0_4 = arith.constant 0 : index
    %c0_5 = arith.constant 0 : index
    %5 = vector.load %arg4[%c0_4, %c0_5] : memref<128x128xbf16, #tpu.memory_space<vmem>>, vector<128x128xbf16>
    %cst_6 = arith.constant dense<0.000000e+00> : vector<32x128xf32>
    %6 = tpu.matmul %4, %5, %cst_6 {dimension_numbers = #tpu.dot_dimension_numbers<[1], [0], [0], [1], [0, 0, 1, 1], [], []>} : vector<32x128xbf16>, vector<128x128xbf16>, vector<32x128xf32> -> vector<32x128xf32>
    %c0_7 = arith.constant 0 : index
    %c0_8 = arith.constant 0 : index
    %7 = vector.load %arg5[%c0_7, %c0_8] : memref<1x128xf32, #tpu.memory_space<vmem>>, vector<1x128xf32>
    %8 = vector.broadcast %7 : vector<1x128xf32> to vector<32x128xf32>
    %9 = arith.addf %6, %8 : vector<32x128xf32>
    %cst_9 = arith.constant 0.000000e+00 : f32
    %10 = vector.broadcast %cst_9 : f32 to vector<32x128xf32>
    %11 = arith.maximumf %9, %10 : vector<32x128xf32>
    %cst_10 = arith.constant 0.000000e+00 : f32
    %12 = vector.broadcast %cst_10 : f32 to vector<1x256xf32>
    %c0_11 = arith.constant 0 : index
    %c0_12 = arith.constant 0 : index
    %13 = vector.load %arg11[%c0_11, %c0_12] : memref<34x256xf32, #tpu.memory_space<vmem>>, vector<1x256xf32>
    tpu.vector_store %arg11[%c0_11, %c0_12], %12 {strides = array<i32>} : memref<34x256xf32, #tpu.memory_space<vmem>>, vector<1x256xf32>,
    %cst_13 = arith.constant 0.000000e+00 : f32
    %14 = vector.broadcast %cst_13 : f32 to vector<1x256xf32>
    %c33 = arith.constant 33 : index
    %c0_14 = arith.constant 0 : index
    %15 = vector.load %arg11[%c33, %c0_14] : memref<34x256xf32, #tpu.memory_space<vmem>>, vector<1x256xf32>
    tpu.vector_store %arg11[%c33, %c0_14], %14 {strides = array<i32>} : memref<34x256xf32, #tpu.memory_space<vmem>>, vector<1x256xf32>,
    %c0_15 = arith.constant 0 : index
    %c0_16 = arith.constant 0 : index
    %c0_17 = arith.constant 0 : index
    %16 = vector.load %arg1[%c0_15, %c0_16, %c0_17] : memref<1x32x128xbf16, #tpu.memory_space<vmem>>, vector<1x32x128xbf16>
    %17 = vector.shape_cast %16 : vector<1x32x128xbf16> to vector<32x128xbf16>
    %18 = arith.extf %17 : vector<32x128xbf16> to vector<32x128xf32>
    %19 = tpu.concatenate %18, %11 in 1 : vector<32x128xf32>, vector<32x128xf32> -> vector<32x256xf32>
    %c1 = arith.constant 1 : index
    %c0_18 = arith.constant 0 : index
    %20 = vector.load %arg11[%c1, %c0_18] : memref<34x256xf32, #tpu.memory_space<vmem>>, vector<32x256xf32>
    tpu.vector_store %arg11[%c1, %c0_18], %19 {strides = array<i32>} : memref<34x256xf32, #tpu.memory_space<vmem>>, vector<32x256xf32>,
    %c0_19 = arith.constant 0 : index
    %c0_20 = arith.constant 0 : index
    %21 = vector.load %arg11[%c0_19, %c0_20] : memref<34x256xf32, #tpu.memory_space<vmem>>, vector<32x256xf32>
    %22 = arith.truncf %21 : vector<32x256xf32> to vector<32x256xbf16>
    %c0_21 = arith.constant 0 : index
    %c0_22 = arith.constant 0 : index
    %c0_23 = arith.constant 0 : index
    %23 = vector.load %arg6[%c0_21, %c0_22, %c0_23] : memref<3x256x256xbf16, #tpu.memory_space<vmem>>, vector<1x256x256xbf16>
    %24 = vector.shape_cast %23 : vector<1x256x256xbf16> to vector<256x256xbf16>
    %cst_24 = arith.constant dense<0.000000e+00> : vector<32x256xf32>
    %25 = tpu.matmul %22, %24, %cst_24 {dimension_numbers = #tpu.dot_dimension_numbers<[1], [0], [0], [1], [0, 0, 1, 1], [], []>} : vector<32x256xbf16>, vector<256x256xbf16>, vector<32x256xf32> -> vector<32x256xf32>
    %c1_25 = arith.constant 1 : index
    %c0_26 = arith.constant 0 : index
    %26 = vector.load %arg11[%c1_25, %c0_26] : memref<34x256xf32, #tpu.memory_space<vmem>>, vector<32x256xf32>
    %27 = arith.truncf %26 : vector<32x256xf32> to vector<32x256xbf16>
    %c1_27 = arith.constant 1 : index
    %c0_28 = arith.constant 0 : index
    %c0_29 = arith.constant 0 : index
    %28 = vector.load %arg6[%c1_27, %c0_28, %c0_29] : memref<3x256x256xbf16, #tpu.memory_space<vmem>>, vector<1x256x256xbf16>
    %29 = vector.shape_cast %28 : vector<1x256x256xbf16> to vector<256x256xbf16>
    %cst_30 = arith.constant dense<0.000000e+00> : vector<32x256xf32>
    %30 = tpu.matmul %27, %29, %cst_30 {dimension_numbers = #tpu.dot_dimension_numbers<[1], [0], [0], [1], [0, 0, 1, 1], [], []>} : vector<32x256xbf16>, vector<256x256xbf16>, vector<32x256xf32> -> vector<32x256xf32>
    %31 = arith.addf %25, %30 : vector<32x256xf32>
    %c2 = arith.constant 2 : index
    %c0_31 = arith.constant 0 : index
    %32 = vector.load %arg11[%c2, %c0_31] : memref<34x256xf32, #tpu.memory_space<vmem>>, vector<32x256xf32>
    %33 = arith.truncf %32 : vector<32x256xf32> to vector<32x256xbf16>
    %c2_32 = arith.constant 2 : index
    %c0_33 = arith.constant 0 : index
    %c0_34 = arith.constant 0 : index
    %34 = vector.load %arg6[%c2_32, %c0_33, %c0_34] : memref<3x256x256xbf16, #tpu.memory_space<vmem>>, vector<1x256x256xbf16>
    %35 = vector.shape_cast %34 : vector<1x256x256xbf16> to vector<256x256xbf16>
    %cst_35 = arith.constant dense<0.000000e+00> : vector<32x256xf32>
    %36 = tpu.matmul %33, %35, %cst_35 {dimension_numbers = #tpu.dot_dimension_numbers<[1], [0], [0], [1], [0, 0, 1, 1], [], []>} : vector<32x256xbf16>, vector<256x256xbf16>, vector<32x256xf32> -> vector<32x256xf32>
    %37 = arith.addf %31, %36 : vector<32x256xf32>
    %c0_36 = arith.constant 0 : index
    %c0_37 = arith.constant 0 : index
    %38 = vector.load %arg7[%c0_36, %c0_37] : memref<1x256xf32, #tpu.memory_space<vmem>>, vector<1x256xf32>
    %39 = vector.broadcast %38 : vector<1x256xf32> to vector<32x256xf32>
    %40 = arith.addf %37, %39 : vector<32x256xf32>
    %cst_38 = arith.constant 0.000000e+00 : f32
    %41 = vector.broadcast %cst_38 : f32 to vector<32x256xf32>
    %42 = arith.maximumf %40, %41 : vector<32x256xf32>
    %cst_39 = arith.constant 0.000000e+00 : f32
    %43 = vector.broadcast %cst_39 : f32 to vector<1x256xf32>
    %c0_40 = arith.constant 0 : index
    %c0_41 = arith.constant 0 : index
    %44 = vector.load %arg12[%c0_40, %c0_41] : memref<34x256xf32, #tpu.memory_space<vmem>>, vector<1x256xf32>
    tpu.vector_store %arg12[%c0_40, %c0_41], %43 {strides = array<i32>} : memref<34x256xf32, #tpu.memory_space<vmem>>, vector<1x256xf32>,
    %cst_42 = arith.constant 0.000000e+00 : f32
    %45 = vector.broadcast %cst_42 : f32 to vector<1x256xf32>
    %c33_43 = arith.constant 33 : index
    %c0_44 = arith.constant 0 : index
    %46 = vector.load %arg12[%c33_43, %c0_44] : memref<34x256xf32, #tpu.memory_space<vmem>>, vector<1x256xf32>
    tpu.vector_store %arg12[%c33_43, %c0_44], %45 {strides = array<i32>} : memref<34x256xf32, #tpu.memory_space<vmem>>, vector<1x256xf32>,
    %c1_45 = arith.constant 1 : index
    %c0_46 = arith.constant 0 : index
    %47 = vector.load %arg12[%c1_45, %c0_46] : memref<34x256xf32, #tpu.memory_space<vmem>>, vector<32x256xf32>
    tpu.vector_store %arg12[%c1_45, %c0_46], %42 {strides = array<i32>} : memref<34x256xf32, #tpu.memory_space<vmem>>, vector<32x256xf32>,
    %c0_47 = arith.constant 0 : index
    %c0_48 = arith.constant 0 : index
    %48 = vector.load %arg12[%c0_47, %c0_48] : memref<34x256xf32, #tpu.memory_space<vmem>>, vector<32x256xf32>
    %49 = arith.truncf %48 : vector<32x256xf32> to vector<32x256xbf16>
    %c0_49 = arith.constant 0 : index
    %c0_50 = arith.constant 0 : index
    %c0_51 = arith.constant 0 : index
    %50 = vector.load %arg8[%c0_49, %c0_50, %c0_51] : memref<3x256x256xbf16, #tpu.memory_space<vmem>>, vector<1x256x256xbf16>
    %51 = vector.shape_cast %50 : vector<1x256x256xbf16> to vector<256x256xbf16>
    %cst_52 = arith.constant dense<0.000000e+00> : vector<32x256xf32>
    %52 = tpu.matmul %49, %51, %cst_52 {dimension_numbers = #tpu.dot_dimension_numbers<[1], [0], [0], [1], [0, 0, 1, 1], [], []>} : vector<32x256xbf16>, vector<256x256xbf16>, vector<32x256xf32> -> vector<32x256xf32>
    %c1_53 = arith.constant 1 : index
    %c0_54 = arith.constant 0 : index
    %53 = vector.load %arg12[%c1_53, %c0_54] : memref<34x256xf32, #tpu.memory_space<vmem>>, vector<32x256xf32>
    %54 = arith.truncf %53 : vector<32x256xf32> to vector<32x256xbf16>
    %c1_55 = arith.constant 1 : index
    %c0_56 = arith.constant 0 : index
    %c0_57 = arith.constant 0 : index
    %55 = vector.load %arg8[%c1_55, %c0_56, %c0_57] : memref<3x256x256xbf16, #tpu.memory_space<vmem>>, vector<1x256x256xbf16>
    %56 = vector.shape_cast %55 : vector<1x256x256xbf16> to vector<256x256xbf16>
    %cst_58 = arith.constant dense<0.000000e+00> : vector<32x256xf32>
    %57 = tpu.matmul %54, %56, %cst_58 {dimension_numbers = #tpu.dot_dimension_numbers<[1], [0], [0], [1], [0, 0, 1, 1], [], []>} : vector<32x256xbf16>, vector<256x256xbf16>, vector<32x256xf32> -> vector<32x256xf32>
    %58 = arith.addf %52, %57 : vector<32x256xf32>
    %c2_59 = arith.constant 2 : index
    %c0_60 = arith.constant 0 : index
    %59 = vector.load %arg12[%c2_59, %c0_60] : memref<34x256xf32, #tpu.memory_space<vmem>>, vector<32x256xf32>
    %60 = arith.truncf %59 : vector<32x256xf32> to vector<32x256xbf16>
    %c2_61 = arith.constant 2 : index
    %c0_62 = arith.constant 0 : index
    %c0_63 = arith.constant 0 : index
    %61 = vector.load %arg8[%c2_61, %c0_62, %c0_63] : memref<3x256x256xbf16, #tpu.memory_space<vmem>>, vector<1x256x256xbf16>
    %62 = vector.shape_cast %61 : vector<1x256x256xbf16> to vector<256x256xbf16>
    %cst_64 = arith.constant dense<0.000000e+00> : vector<32x256xf32>
    %63 = tpu.matmul %60, %62, %cst_64 {dimension_numbers = #tpu.dot_dimension_numbers<[1], [0], [0], [1], [0, 0, 1, 1], [], []>} : vector<32x256xbf16>, vector<256x256xbf16>, vector<32x256xf32> -> vector<32x256xf32>
    %64 = arith.addf %58, %63 : vector<32x256xf32>
    %c0_65 = arith.constant 0 : index
    %c0_66 = arith.constant 0 : index
    %65 = vector.load %arg9[%c0_65, %c0_66] : memref<1x256xf32, #tpu.memory_space<vmem>>, vector<1x256xf32>
    %66 = vector.broadcast %65 : vector<1x256xf32> to vector<32x256xf32>
    %67 = arith.addf %64, %66 : vector<32x256xf32>
    %cst_67 = arith.constant 0.000000e+00 : f32
    %68 = vector.broadcast %cst_67 : f32 to vector<32x256xf32>
    %69 = arith.maximumf %67, %68 : vector<32x256xf32>
    %c0_68 = arith.constant 0 : index
    %c0_69 = arith.constant 0 : index
    %c0_70 = arith.constant 0 : index
    %70 = vector.load %arg10[%c0_68, %c0_69, %c0_70] : memref<1x32x256xf32, #tpu.memory_space<vmem>>, vector<1x32x256xf32>
    %71 = vector.shape_cast %70 : vector<1x32x256xf32> to vector<32x256xf32>
    %72 = vector.shape_cast %69 : vector<32x256xf32> to vector<1x32x256xf32>
    tpu.vector_store %arg10[%c0_68, %c0_69, %c0_70], %72 {strides = array<i32>} : memref<1x32x256xf32, #tpu.memory_space<vmem>>, vector<1x32x256xf32>,
    return
  }
  func.func @transform_0(%arg0: i32) -> (i32, i32, i32) {
    %c0_i32 = arith.constant 0 : i32
    %c0_i32_0 = arith.constant 0 : i32
    %c0_i32_1 = arith.constant 0 : i32
    return %arg0, %c0_i32, %c0_i32_0 : i32, i32, i32
  }
  func.func @transform_1(%arg0: i32) -> (i32, i32, i32) {
    %c0_i32 = arith.constant 0 : i32
    %c0_i32_0 = arith.constant 0 : i32
    %c0_i32_1 = arith.constant 0 : i32
    return %arg0, %c0_i32, %c0_i32_0 : i32, i32, i32
  }
  func.func @transform_2(%arg0: i32) -> (i32, i32) {
    %c0_i32 = arith.constant 0 : i32
    %c0_i32_0 = arith.constant 0 : i32
    %c0_i32_1 = arith.constant 0 : i32
    return %c0_i32, %c0_i32_0 : i32, i32
  }
  func.func @transform_3(%arg0: i32) -> (i32, i32) {
    %c0_i32 = arith.constant 0 : i32
    %c0_i32_0 = arith.constant 0 : i32
    %c0_i32_1 = arith.constant 0 : i32
    return %c0_i32, %c0_i32_0 : i32, i32
  }
  func.func @transform_4(%arg0: i32) -> (i32, i32) {
    %c0_i32 = arith.constant 0 : i32
    %c0_i32_0 = arith.constant 0 : i32
    %c0_i32_1 = arith.constant 0 : i32
    return %c0_i32, %c0_i32_0 : i32, i32
  }
  func.func @transform_5(%arg0: i32) -> (i32, i32, i32) {
    %c0_i32 = arith.constant 0 : i32
    %c0_i32_0 = arith.constant 0 : i32
    %c0_i32_1 = arith.constant 0 : i32
    %c0_i32_2 = arith.constant 0 : i32
    return %c0_i32, %c0_i32_0, %c0_i32_1 : i32, i32, i32
  }
  func.func @transform_6(%arg0: i32) -> (i32, i32) {
    %c0_i32 = arith.constant 0 : i32
    %c0_i32_0 = arith.constant 0 : i32
    %c0_i32_1 = arith.constant 0 : i32
    return %c0_i32, %c0_i32_0 : i32, i32
  }
  func.func @transform_7(%arg0: i32) -> (i32, i32, i32) {
    %c0_i32 = arith.constant 0 : i32
    %c0_i32_0 = arith.constant 0 : i32
    %c0_i32_1 = arith.constant 0 : i32
    %c0_i32_2 = arith.constant 0 : i32
    return %c0_i32, %c0_i32_0, %c0_i32_1 : i32, i32, i32
  }
  func.func @transform_8(%arg0: i32) -> (i32, i32) {
    %c0_i32 = arith.constant 0 : i32
    %c0_i32_0 = arith.constant 0 : i32
    %c0_i32_1 = arith.constant 0 : i32
    return %c0_i32, %c0_i32_0 : i32, i32
  }
  func.func @transform_9(%arg0: i32) -> (i32, i32, i32) {
    %c0_i32 = arith.constant 0 : i32
    %c0_i32_0 = arith.constant 0 : i32
    %c0_i32_1 = arith.constant 0 : i32
    return %arg0, %c0_i32, %c0_i32_0 : i32, i32, i32
  }
}

</mosaic_0001>

<bundles_post_ra>
// kernel: tpu_custom_call.1
= control target key start
LH: loop header
LB: loop body
LE: loop exit
PB: predicated region body
PF: predicated region fallthrough
CT: control target
= control target key end

     0   :  { %s3922_s0 = inlined_call_operand.hbm [shape: bf16[2,32,128], index: 0, kind: input, shape index: {}]   ;;  %s3923_s1 = inlined_call_operand.vmem [shape: bf16[2,16,128], index: 1, kind: input, shape index: {}]   ;;  %s3924_s2 = inlined_call_operand.vmem [shape: bf16[32,16], index: 2, kind: input, shape index: {}]   ;;  %s3925_s3 = inlined_call_operand.hbm [shape: bf16[128,128], index: 3, kind: input, shape index: {}]   ;;  %s3926_s4 = inlined_call_operand.vmem [shape: f32[1,128], index: 4, kind: input, shape index: {}]   ;;  %s3927_s5 = inlined_call_operand.hbm [shape: bf16[3,256,256], index: 5, kind: input, shape index: {}]   ;;  %s3928_s6 = inlined_call_operand.vmem [shape: f32[1,256], index: 6, kind: input, shape index: {}]   ;;  %s3929_s7 = inlined_call_operand.hbm [shape: bf16[3,256,256], index: 7, kind: input, shape index: {}]   ;;  %s3930_s8 = inlined_call_operand.vmem [shape: f32[1,256], index: 8, kind: input, shape index: {}]   ;;  %s3931_s9 = inlined_call_operand.hbm [shape: f32[2,32,256], index: 9, kind: output, shape index: {}]  }
   0x1   :  { %3940 = sst [smem:[#allocation19_spill]] %s3925_s3 }
   0x2   :  { %3941 = sst [smem:[#allocation20_spill]] %s3931_s9 }
   0x3   :  { %14 = vsyncpa [#allocation5], 0 }
   0x4   :  { %16 = vsyncpa [#allocation5 + $0x1], 0 }
   0x5   :  { %17 = vsyncpa [#allocation8], 0 }
   0x6   :  { %18 = vsyncpa [#allocation11], 0 }
   0x7   :  { %19 = vsyncpa [#allocation6], 0 }
   0x8   :  { %21 = vsyncpa [#allocation6 + $0x1], 0  ;;  %s3541_s30 = smov 0   ;;  %s3543_s10 = smov 0  }
   0x9   :  { %s3545_s11 = smov 0   ;;  %s3547_s12 = smov 0  }
   0xa LB: > { %3942 = sst [smem:[#allocation17_spill]] %s3465_s30  ;;  %s3562_s13 = sadd.s32 4294967295, %s3477_s12   ;;  %s3477_s12 = sphi %s3547_s12, %s3969_s12   ;;  %s3473_s11 = sphi %s3545_s11, %s3968_s11   ;;  %s3469_s10 = sphi %s3543_s10, %s3967_s10   ;;  %s3465_s30 = sphi %s3541_s30, %s3966_s30  }
   0xb   : > { %s2595_s14 = sadd.s32 4294967294, %s3477_s12   ;;  %p47_p0 = scmp.ne.s32.totalorder %s3469_s10, %s3465_s30 }
   0xc   : > { %p3932_p1 = scmp.eq.s32.totalorder %s3562_s13, 0  ;;  %p250_p3 = scmp.eq.s32.totalorder %s2595_s14, 1 }
   0xd   : > { %p2596_p5 = scmp.ge.s32.totalorder %s3477_s12, 1  ;;  %p257_p7 = scmp.lt.s32.totalorder %s3477_s12, 3 }
   0xe   : > { %p3571_p4 = por %p3932_p1, %p47_p0  ;;  %p3576_p6 = por %p250_p3, %p47_p0 }
   0xf   : > { %p3581_p8 = pnand %p2596_p5, %p257_p7  ;;  %s3479_s18 = smov [#allocation7]  }
  0x10   : > { %s3943_s15 = scalar_select %p3571_p4, 1, 0 }
  0x11   : > { %s3944_s16 = scalar_select %p3576_p6, 1, 0 }
  0x12   : > { %s3946_s17 = scalar_select %p3581_p8, 1, 0 }
  0x13   : > { %3945 = sst [smem:[#allocation18_spill]] %s3944_s16  ;;  %s272_s19 = sshll.u32 %s3479_s18, 4  ;;  %s3585_s19 = int_to_ptr.vmem [resolvable:$true] %s272_s19 }
  0x14   : > { %p2922_p9 = pneg %p3581_p8  ;;  %s3480_s21 = smov [#allocation9]  }
  0x15   : > { %s288_s22 = sshll.u32 %s3480_s21, 4  ;;  %s3948_s3 = sld [smem:[#allocation19_spill]]  ;;  %s3596_s22 = int_to_ptr.vmem [resolvable:$true] %s288_s22 }
  0x16   : > { %p3592_p11 = pnand %p2922_p9, %p3932_p1 }
  0x18   : > { %p3606_p13 = pneg %p3592_p11 }
  0x1b   : > { %s3289_s25 = scalar_lea.hbm %s3948_s3, 1024 }
  0x1c   : > { %p3290_p12 = scmp.ne.s32.totalorder %s3948_s3, %s3289_s25  ;;  %p3296_p5 = scmp.lt.u32.totalorder %s3289_s25, %s3948_s3 }
  0x1e   : > { %p3292_p0 = pnand %p3606_p13, %p3290_p12 }
  0x20   : > { %p3293_p3 = pneg %p3292_p0 }
  0x22   : > { %p3298_p7 = pnand %p3296_p5, %p3293_p3 }
  0x24   : > { %3301 = shalt.err (!%p3298_p7)
}
  0x25   : > { %s3302_s18 = scalar_lea.vmem %s3585_s19, 1024  ;;  %p3310_p2 = scmp.lt.s32.totalorder %s3585_s19, %s3585_s19 }
  0x26   : > { %p3303_p9 = scmp.ne.s32.totalorder %s3585_s19, %s3302_s18  ;;  %p3311_p6 = scmp.lt.s32.totalorder %s3302_s18, %s3302_s18 }
  0x28   : > { %p3305_p10 = pnand %p3303_p9, %p3606_p13  ;;  %p3312_p12 = por %p3311_p6, %p3310_p2 }
  0x2a   : > { %p3306_p1 = pneg %p3305_p10 }
  0x2c   : > { %p3313_p0 = pnand %p3312_p12, %p3306_p1 }
  0x2e   : > { %3316 = shalt.err (!%p3313_p0)
}
  0x2f   : > { %s3935_s21 = smov 64   ;;  %s3936_s23 = smov 4  }
  0x30   : > { %2925 = dma.hbm_to_vmem [thread:$0]  (!%p3592_p11), %s3948_s3, 1024, %s3585_s19, [#allocation8], %s3935_s21, %s3935_s21, %s3936_s23  }
  0x31   : > { %s3317_s29 = scalar_lea.hbm %s3927_s5, 12288 }
  0x32   : > { %p3318_p1 = scmp.ne.s32.totalorder %s3927_s5, %s3317_s29  ;;  %p3324_p10 = scmp.lt.u32.totalorder %s3317_s29, %s3927_s5 }
  0x34   : > { %p3320_p2 = pnand %p3318_p1, %p3606_p13 }
  0x36   : > { %p3321_p6 = pneg %p3320_p2 }
  0x38   : > { %p3326_p3 = pnand %p3324_p10, %p3321_p6 }
  0x3a   : > { %3329 = shalt.err (!%p3326_p3)
}
  0x3b   : > { %s3330_s19 = scalar_lea.vmem %s3596_s22, 12288  ;;  %p3338_p12 = scmp.lt.s32.totalorder %s3596_s22, %s3596_s22 }
  0x3c   : > { %p3331_p5 = scmp.ne.s32.totalorder %s3596_s22, %s3330_s19  ;;  %p3339_p0 = scmp.lt.s32.totalorder %s3330_s19, %s3330_s19 }
  0x3e   : > { %p3333_p7 = pnand %p3331_p5, %p3606_p13  ;;  %p3340_p1 = por %p3339_p0, %p3338_p12 }
  0x40   : > { %p3334_p9 = pneg %p3333_p7 }
  0x42   : > { %p3341_p2 = pnand %p3340_p1, %p3334_p9 }
  0x44   : > { %3344 = shalt.err (!%p3341_p2)
}
  0x45   : > { %s3483_s24 = smov 128   ;;  %s3484_s30 = smov 8  }
  0x46   : > { %2928 = dma.hbm_to_vmem [thread:$0]  (!%p3592_p11), %s3927_s5, 12288, %s3596_s22, [#allocation8], %s3483_s24, %s3483_s24, %s3484_s30  }
  0x47   : > { %s3485_s26 = smov [#allocation10]   ;;  %s3654_s29 = sadd.s32 1, %s3477_s12  }
  0x48   : > { %s304_s27 = sshll.u32 %s3485_s26, 4  ;;  %s3345_s19 = scalar_lea.hbm %s3929_s7, 12288  ;;  %s305_s27 = int_to_ptr.vmem [resolvable:$true] %s304_s27 }
  0x49   : > { %p3346_p6 = scmp.ne.s32.totalorder %s3929_s7, %s3345_s19  ;;  %p3352_p5 = scmp.lt.u32.totalorder %s3345_s19, %s3929_s7 }
  0x4b   : > { %p3348_p10 = pnand %p3346_p6, %p3606_p13 }
  0x4d   : > { %p3349_p3 = pneg %p3348_p10 }
  0x4f   : > { %p3354_p7 = pnand %p3352_p5, %p3349_p3 }
  0x51   : > { %3357 = shalt.err (!%p3354_p7)
}
  0x52   : > { %s3358_s22 = scalar_lea.vmem %s305_s27, 12288  ;;  %p3366_p1 = scmp.lt.s32.totalorder %s305_s27, %s305_s27 }
  0x53   : > { %p3359_p9 = scmp.ne.s32.totalorder %s305_s27, %s3358_s22  ;;  %p3367_p2 = scmp.lt.s32.totalorder %s3358_s22, %s3358_s22 }
  0x55   : > { %p3361_p12 = pnand %p3359_p9, %p3606_p13  ;;  %p3368_p4 = por %p3367_p2, %p3366_p1 }
  0x57   : > { %p3362_p0 = pneg %p3361_p12 }
  0x59   : > { %p3369_p8 = pnand %p3368_p4, %p3362_p0 }
  0x5b   : > { %3372 = shalt.err (!%p3369_p8)
}
  0x5c   : > { %2931 = dma.hbm_to_vmem [thread:$0]  (!%p3592_p11), %s3929_s7, 12288, %s305_s27, [#allocation11], %s3483_s24, %s3483_s24, %s3484_s30  }
  0x5d   : > { %s31_s3 = ssub.s32 %s3477_s12, %s3654_s29  ;;  %s34_s9 = sadd.s32 1, %s3473_s11 }
  0x5e   : > { %p32_p4 = scmp.eq.s32.totalorder %s31_s3, 0  ;;  %p41_p8 = scmp.ne.s32.totalorder %s3473_s11, %s3469_s10 }
  0x5f   : > { %p42_p13 = scmp.eq.s32.totalorder %s3477_s12, 0  ;;  %p2943_p6 = scmp.lt.s32.totalorder %s3477_s12, 2 }
  0x60   : > { %s3682_s20 = scalar_select %p32_p4, %s3473_s11, %s34_s9  }
  0x61   : > { %p43_p10 = por %p42_p13, %p41_p8  ;;  %p3950_p3 = scmp.eq.s32.totalorder %s3562_s13, 1 }
  0x62   : > { %s321_s16 = sand.u32 1, %s3473_s11   ;;  %s2823_s25 = sshll.u32 %s3477_s12, 8 }
  0x63   : > { %p3686_p5 = por %p3950_p3, %p41_p8  ;;  %s2601_s26 = sshll.u32 %s321_s16, 4 }
  0x64   : > { %s3695_s24 = scalar_lea.hbm %s3922_s0, %s2823_s25  ;;  %s325_s30 = scalar_lea.vmem [#allocation4], %s2601_s26 }
  0x65   : > { %s332_s27 = sshll.u32 %s325_s30, 4  ;;  %p3697_p11 = pnand %p2943_p6, %p43_p10  ;;  %s3701_s27 = int_to_ptr.vmem [resolvable:$true] %s332_s27 }
  0x66   : > { %s3703_s22 = scalar_lea.sflag [#allocation5], %s321_s16  ;;  %s3373_s21 = scalar_lea.hbm %s3695_s24, 256 }
  0x67   : > { %p3374_p7 = scmp.ne.s32.totalorder %s3695_s24, %s3373_s21  ;;  %p3375_p9 = pneg %p3697_p11 }
  0x68   : > { %s3378_s9 = scalar_lea.hbm %s3922_s0, 512  ;;  %p3379_p1 = scmp.lt.u32.totalorder %s3695_s24, %s3922_s0 }
  0x69   : > { %p3376_p12 = pnand %p3375_p9, %p3374_p7  ;;  %p3380_p2 = scmp.lt.u32.totalorder %s3378_s9, %s3373_s21 }
  0x6a   : > { %p3382_p8 = scmp.lt.u32.totalorder %s3373_s21, %s3695_s24 }
  0x6b   : > { %p3377_p0 = pneg %p3376_p12  ;;  %p3381_p4 = por %p3380_p2, %p3379_p1 }
  0x6d   : > { %p3383_p13 = por %p3382_p8, %p3381_p4 }
  0x6f   : > { %p3384_p6 = pnand %p3383_p13, %p3377_p0 }
  0x71   : > { %3387 = shalt.err (!%p3384_p6)
}
  0x72   : > { %s3388_s16 = scalar_lea.vmem %s3701_s27, 256  ;;  %s3486_s14 = smov [#allocation4]  }
  0x73   : > { %p3389_p10 = scmp.ne.s32.totalorder %s3701_s27, %s3388_s16  ;;  %s3393_s18 = sshll.u32 %s3486_s14, 4  ;;  %s3394_s18 = int_to_ptr.vmem [resolvable:$false] %s3393_s18 }
  0x74   : > { %s3395_s30 = scalar_lea.vmem %s3394_s18, 512  ;;  %p3396_p12 = scmp.lt.s32.totalorder %s3701_s27, %s3394_s18 }
  0x75   : > { %p3391_p3 = pnand %p3389_p10, %p3375_p9  ;;  %p3397_p1 = scmp.lt.s32.totalorder %s3395_s30, %s3388_s16 }
  0x77   : > { %p3392_p7 = pneg %p3391_p3  ;;  %p3398_p2 = por %p3397_p1, %p3396_p12 }
  0x79   : > { %p3399_p4 = pnand %p3398_p2, %p3392_p7 }
  0x7b   : > { %3402 = shalt.err (!%p3399_p4)
}
  0x7c   : > { %s3953_s21 = smov 4   ;;  %s3954_s23 = smov 64  }
  0x7d   : > { %2935 = dma.hbm_to_vmem [thread:$0]  (!%p3697_p11), %s3695_s24, 256, %s3701_s27, %s3703_s22, %s3954_s23, %s3954_s23, %s3953_s21  }
  0x7e   : > { %p3955_p9 = scmp.ne.s32.totalorder %s3946_s17, 0 }
  0x7f   : > { %s3737_s3 = sand.u32 (!%p3955_p9), 1, %s3469_s10   ;;  %p3956_p0 = scmp.ne.s32.totalorder (!%p3955_p9), %s3943_s15, 0 }
  0x80   : > { %352 = sbr.rel (%p3955_p9) target bundleno = 1345 (0x541), region = 56  ;;  %s2605_s9 = sshll.u32 (!%p3955_p9), %s3737_s3, 4 }
  0x81   : > { %s355_s25 = scalar_lea.sflag (!%p3955_p9), [#allocation5], %s3737_s3  ;;  %s3741_s26 = scalar_lea.vmem (!%p3955_p9), [#allocation4], %s2605_s9 }
  0x87   : > { %3448 = dma.done.wait (%p3956_p0), %s355_s25, 256  }
  0x88   : > { %3450 = vsyncadd (%p3956_p0), %s355_s25, 4294967040  ;;  %p3957_p11 = scmp.eq.s32.totalorder %s3562_s13, 0 }
  0x8a   : > { %3452 = dma.done.wait (%p3957_p11), [#allocation8], 13312   ;;  %p3958_p8 = pmov %p3957_p11 }
  0x8c   : > { %3454 = vsyncadd (%p3958_p8), [#allocation8], 4294953984  ;;  %p3959_p13 = pmov %p3958_p8 }
  0x8d   : > { %p3960_p6 = pmov %p3958_p8 }
  0x8e   : > { %3456 = dma.done.wait (%p3959_p13), [#allocation11], 12288  }
  0x8f   : > { %3458 = vsyncadd (%p3960_p6), [#allocation11], 4294955008  ;;  %p410_p10 = scmp.lt.s32.totalorder %s3562_s13, 1  ;;  %vm438_vm0 = vcmask 130048   ;;  %v2991_v1 = vld [vmem:[%s3924_s2] sm:$0xff]   ;;  %v2992_v2 = vld [vmem:[%s3924_s2 + $0x8] sm:$0xff]   ;;  %v620_v43 = vlaneseq }
  0x90   : > { %2850 = vmatprep.mubr.msk.bf16.mxu0 %vm438_vm0, %v2991_v1  ;;  %v2993_v3 = vld [vmem:[#allocation7] sm:$0xff]   ;;  %v2994_v4 = vld [vmem:[#allocation7 + $0x8] sm:$0xff]   ;;  %v2995_v5 = vld [vmem:[#allocation7 + $0x10] sm:$0xff]   ;;  %v3487_v47 = vmov 0.0   ;;  %vm645_vm2 = vcmask 1040384   ;;  %vm1283_vm4 = vcmask 1046528  }
  0x91   : > { %s411_s17 = scalar_select %p410_p10, %s3562_s13, 1  ;;  %2854 = vmatprep.subr.bf16.mxu1 %v2993_v3  ;;  %v2996_v6 = vld [vmem:[#allocation7 + $0x18] sm:$0xff]   ;;  %v2997_v7 = vld [vmem:[#allocation7 + $0x20] sm:$0xff]   ;;  %v2998_v8 = vld [vmem:[#allocation7 + $0x28] sm:$0xff]   ;;  %vm622_vm1 = vcmp.lt.s32.totalorder %v620_v43, 256 }
  0x92   : > { %2855 = vmatpush3.bf16.msra.mxu1 %v2993_v3  ;;  %v2999_v9 = vld [vmem:[#allocation7 + $0x30] sm:$0xff]   ;;  %v3000_v10 = vld [vmem:[#allocation7 + $0x38] sm:$0xff]   ;;  %v3001_v11 = vld [vmem:[#allocation9 + $0x100] ss:$8 sps:$4 sm:$0xff]   ;;  %vm765_vm3 = vsmask.f32 7424 }
  0x93   : > { %s2824_s24 = sshll.u32 %s411_s17, 3  ;;  %2856 = vmatprep.subr.bf16.mxu1 %v2994_v4  ;;  %v3003_v12 = vld [vmem:[#allocation9 + $0x104] ss:$8 sps:$4 sm:$0xff]   ;;  %v3006_v13 = vld [vmem:[#allocation9 + $0x114] ss:$8 sps:$4 sm:$0xff]   ;;  %s2609_s17 = sshll.u32 %s3737_s3, 6 }
  0x94   : > { %s414_s19 = scalar_lea.vmem %s3923_s1, %s2824_s24  ;;  %v3004_v14 = vld [vmem:[#allocation9 + $0x110] ss:$8 sps:$4 sm:$0xff]   ;;  %v3009_v15 = vld [vmem:[#allocation9 + $0x124] ss:$8 sps:$4 sm:$0xff]   ;;  %v3007_v16 = vld [vmem:[#allocation9 + $0x120] ss:$8 sps:$4 sm:$0xff]  }
  0x95   : > { %v2990_v0 = vld [vmem:[%s414_s19] sm:$0xff]   ;;  %v3012_v17 = vld [vmem:[#allocation9 + $0x134] ss:$8 sps:$4 sm:$0xff]   ;;  %v3010_v18 = vld [vmem:[#allocation9 + $0x130] ss:$8 sps:$4 sm:$0xff]   ;;  %s409_s24 = scalar_lea.vmem [#allocation12], %s2609_s17 }
  0x96   : > { %2848 = vmatprep.subr.bf16.mxu0 %v2990_v0  ;;  %2857 = vmatpush3.bf16.msra.mxu1 %v2994_v4  ;;  %v3015_v19 = vld [vmem:[#allocation9 + $0x144] ss:$8 sps:$4 sm:$0xff]   ;;  %v3013_v20 = vld [vmem:[#allocation9 + $0x140] ss:$8 sps:$4 sm:$0xff]   ;;  %v3018_v21 = vld [vmem:[#allocation9 + $0x154] ss:$8 sps:$4 sm:$0xff]  }
  0x97   : > { %2849 = vmatpush3.bf16.msra.mxu0 %v2990_v0  ;;  %2858 = vmatprep.subr.bf16.mxu1 %v2995_v5  ;;  %v3016_v22 = vld [vmem:[#allocation9 + $0x150] ss:$8 sps:$4 sm:$0xff]   ;;  %v3021_v23 = vld [vmem:[#allocation9 + $0x164] ss:$8 sps:$4 sm:$0xff]   ;;  %v3019_v24 = vld [vmem:[#allocation9 + $0x160] ss:$8 sps:$4 sm:$0xff]  }
  0x98   : > { %970 = vmatprep.subr.bf16.mxu0 %v3003_v12  ;;  %v3024_v25 = vld [vmem:[#allocation9 + $0x174] ss:$8 sps:$4 sm:$0xff]   ;;  %v3022_v26 = vld [vmem:[#allocation9 + $0x170] ss:$8 sps:$4 sm:$0xff]   ;;  %v3027_v27 = vld [vmem:[#allocation9 + $0x184] ss:$8 sps:$4 sm:$0xff]  }
  0x99   : > { %v3025_v28 = vld [vmem:[#allocation9 + $0x180] ss:$8 sps:$4 sm:$0xff]   ;;  %v3030_v35 = vld [vmem:[#allocation9 + $0x194] ss:$8 sps:$4 sm:$0xff]   ;;  %v3028_v36 = vld [vmem:[#allocation9 + $0x190] ss:$8 sps:$4 sm:$0xff]  }
  0x9a   : > { %2851 = vmatmul.mubr.msk.bf16.vlgmr.msra.gmra.mrb[0].mxu0 %vm438_vm0, %v2992_v2  ;;  %2859 = vmatpush3.bf16.msra.mxu1 %v2995_v5  ;;  %v3033_v37 = vld [vmem:[#allocation9 + $0x1a4] ss:$8 sps:$4 sm:$0xff]   ;;  %v3031_v38 = vld [vmem:[#allocation9 + $0x1a0] ss:$8 sps:$4 sm:$0xff]   ;;  %v3036_v39 = vld [vmem:[#allocation9 + $0x1b4] ss:$8 sps:$4 sm:$0xff]  }
  0x9b   : > { %2860 = vmatprep.subr.bf16.mxu1 %v2996_v6  ;;  %971 = vmatpush1.bf16.msra.mxu0 %v3001_v11  ;;  %v3034_v40 = vld [vmem:[#allocation9 + $0x1b0] ss:$8 sps:$4 sm:$0xff]   ;;  %v3039_v44 = vld [vmem:[#allocation9 + $0x1c4] ss:$8 sps:$4 sm:$0xff]   ;;  %v3037_v46 = vld [vmem:[#allocation9 + $0x1c0] ss:$8 sps:$4 sm:$0xff]  }
  0x9c   : > { %972 = vmatprep.subr.bf16.mxu0 %v3006_v13  ;;  %v2827_v41 = vld [vmem:[%s3741_s26] sm:$0xff]   ;;  %624 = vst.msk [vmem:[#allocation2] ss:$8 sm:$0x3] %vm622_vm1, %v3487_v47  ;;  %v2834_v52 = vld [vmem:[%s3741_s26 + $0x8] sm:$0xff]   ;;  %s2481_s27 = sshll.u32 %s409_s24, 4  ;;  %s3873_s27 = int_to_ptr.vmem [resolvable:$true] %s2481_s27 }
  0x9d   : > { %v2828_v42 = vunpack.c.l.bf16 %v2827_v41  ;;  %627 = vst.msk [vmem:[#allocation2 + $0x41] ss:$8 sm:$0x3] %vm622_vm1, %v3487_v47  ;;  %1547 = vst.msk [vmem:[#allocation3] ss:$8 sm:$0x3] %vm622_vm1, %v3487_v47  ;;  %v2829_v51 = vunpack.c.h.bf16 %v2827_v41  ;;  %v2832_v54 = vunpack.c.l.bf16 %v2834_v52  ;;  %v2833_v55 = vunpack.c.h.bf16 %v2834_v52 }
  0x9e   : > { %2861 = vmatpush3.bf16.msra.mxu1 %v2996_v6  ;;  %1550 = vst.msk [vmem:[#allocation3 + $0x41] ss:$8 sm:$0x3] %vm622_vm1, %v3487_v47  ;;  %v3040_v48 = vld [vmem:[#allocation9 + $0x1d0] ss:$8 sps:$4 sm:$0xff]   ;;  %s2825_s15 = sshll.u32 %s3562_s13, 10 }
  0x9f   : > { %2862 = vmatprep.subr.bf16.mxu1 %v2997_v7  ;;  %973 = vmatpush1.bf16.msra.mxu0 %v3004_v14  ;;  %v646_v45 = vrot.slane %v2828_v42, 7  ;;  %v3042_v49 = vld [vmem:[#allocation9 + $0x1d4] ss:$8 sps:$4 sm:$0xff]   ;;  %v3045_v50 = vld [vmem:[#allocation9 + $0x1e4] ss:$8 sps:$4 sm:$0xff]   ;;  %v648_v56 = vrot.slane %v2829_v51, 7 }
  0xa0   : > { %974 = vmatprep.subr.bf16.mxu0 %v3009_v15  ;;  %v3043_v53 = vld [vmem:[#allocation9 + $0x1e0] ss:$8 sps:$4 sm:$0xff]   ;;  %v3048_v57 = vld [vmem:[#allocation9 + $0x1f4] ss:$8 sps:$4 sm:$0xff]   ;;  %v652_v59 = vrot.slane %v2832_v54, 7  ;;  %v656_v60 = vrot.slane %v2833_v55, 7 }
  0xa1   : > { %670 = vst [vmem:[#allocation2] sm:$0xfe] %v646_v45  ;;  %v3770_v58 = vsel %vm645_vm2, %v646_v45, %v648_v56  ;;  %v3046_v61 = vld [vmem:[#allocation9 + $0x1f0] ss:$8 sps:$4 sm:$0xff]   ;;  %v3051_v1 = vld [vmem:[#allocation9 + $0x4] ss:$8 sps:$4 sm:$0xff]  }
  0xa2   : > { %2863 = vmatpush3.bf16.msra.mxu1 %v2997_v7  ;;  %v653_v62 = vsel %vm645_vm2, %v648_v56, %v652_v59  ;;  %v657_v63 = vsel %vm645_vm2, %v652_v59, %v656_v60  ;;  %678 = vst [vmem:[#allocation2 + $0x40] sm:$0x1] %v656_v60  ;;  %v2617_v2 = vld [vmem:[%s3926_s4] ss:$0 sm:$0xff]  ;;  %v3052_v55 = vld [vmem:[#allocation9 + $0x10] ss:$8 sps:$4 sm:$0xff]  }
  0xa3   : > { %2864 = vmatprep.subr.bf16.mxu1 %v2998_v8  ;;  %975 = vmatpush1.bf16.msra.mxu0 %v3007_v16  ;;  %v3774_v0 = vpack.c.bf16 %v657_v63, %v653_v62  ;;  %v3049_v47 = vld [vmem:[#allocation9] ss:$8 sps:$4 sm:$0xff]   ;;  %v3057_v59 = vld [vmem:[#allocation9 + $0x24] ss:$8 sps:$4 sm:$0xff]   ;;  %v3060_v63 = vld [vmem:[#allocation9 + $0x34] ss:$8 sps:$4 sm:$0xff]  }
  0xa4   : > { %976 = vmatprep.subr.bf16.mxu0 %v3012_v17  ;;  %s3961_s16 = sld [smem:[#allocation20_spill]]  ;;  %s2468_s13 = scalar_lea.sflag [#allocation6], %s3737_s3 }
  0xa5   : > { %s3403_s18 = scalar_lea.vmem %s3873_s27, 1024  ;;  %s3488_s30 = smov [#allocation12]  }
  0xa6   : > { %2865 = vmatpush3.bf16.msra.mxu1 %v2998_v8  ;;  %p3404_p3 = scmp.ne.s32.totalorder %s3873_s27, %s3403_s18  ;;  %s3407_s21 = sshll.u32 %s3488_s30, 4  ;;  %s3408_s21 = int_to_ptr.vmem [resolvable:$false] %s3407_s21 }
  0xa7   : > { %2866 = vmatprep.subr.bf16.mxu1 %v2999_v9  ;;  %977 = vmatpush1.bf16.msra.mxu0 %v3010_v18  ;;  %s3409_s23 = scalar_lea.vmem %s3408_s21, 2048  ;;  %p3410_p1 = scmp.lt.s32.totalorder %s3873_s27, %s3408_s21 }
  0xa8   : > { %978 = vmatprep.subr.bf16.mxu0 %v3015_v19  ;;  %v724_v13 = vld [vmem:[#allocation2] sm:$0xfe]  ;;  %p3405_p7 = pnand %p3404_p3, %p3686_p5  ;;  %p3411_p2 = scmp.lt.s32.totalorder %s3409_s23, %s3403_s18 }
  0xa9   : > { %v728_v19 = vpack.c.bf16 %v3770_v58, %v724_v13  ;;  %v3064_v13 = vld [vmem:[#allocation9 + $0x50] ss:$8 sps:$4 sm:$0xff]  }
  0xaa   : > { %2867 = vmatpush3.bf16.msra.mxu1 %v2999_v9  ;;  %s3878_s14 = scalar_lea.hbm %s3961_s16, %s2825_s15  ;;  %p3406_p12 = pneg %p3405_p7 }
  0xab   : > { %2868 = vmatprep.subr.bf16.mxu1 %v3000_v10  ;;  %979 = vmatpush1.bf16.msra.mxu0 %v3013_v20  ;;  %p3412_p4 = por %p3411_p2, %p3410_p1 }
  0xac   : > { %980 = vmatprep.subr.bf16.mxu0 %v3018_v21 }
  0xad   : > { %p3413_p9 = pnand %p3412_p4, %p3406_p12 }
  0xae   : > { %2869 = vmatpush3.bf16.msra.mxu1 %v3000_v10 }
  0xaf   : > { %981 = vmatpush1.bf16.msra.mxu0 %v3016_v22 }
  0xb0   : > { %982 = vmatprep.subr.bf16.mxu0 %v3021_v23 }
  0xb3   : > { %983 = vmatpush1.bf16.msra.mxu0 %v3019_v24 }
  0xb4   : > { %984 = vmatprep.subr.bf16.mxu0 %v3024_v25  ;;  %v769_v25 = vshll.u32 %v728_v19, 16 }
  0xb7   : > { %985 = vmatpush1.bf16.msra.mxu0 %v3022_v26 }
  0xb8   : > { %986 = vmatprep.subr.bf16.mxu0 %v3027_v27  ;;  %v767_v27 = vshrl.u32 %v728_v19, 16  ;;  %v3157_v19 = vld [vmem:[#allocation10 + $0x140] ss:$8 sps:$4 sm:$0xff]  }
  0xbb   : > { %987 = vmatpush1.bf16.msra.mxu0 %v3025_v28  ;;  %v771_v28 = vrot.slane %v769_v25, 1  ;;  %v3160_v25 = vld [vmem:[#allocation10 + $0x150] ss:$8 sps:$4 sm:$0xff]  }
  0xbc   : > { %988 = vmatprep.subr.bf16.mxu0 %v3030_v35 }
  0xbf   : > { %989 = vmatpush1.bf16.msra.mxu0 %v3028_v36  ;;  %v772_v36 = vor.u32 %v771_v28, %v767_v27  ;;  %v3073_v27 = vld [vmem:[#allocation9 + $0x80] ss:$8 sps:$4 sm:$0xff]   ;;  %v3078_v28 = vld [vmem:[#allocation9 + $0x94] ss:$8 sps:$4 sm:$0xff]  }
  0xc0   : > { %990 = vmatprep.subr.bf16.mxu0 %v3033_v37 }
  0xc3   : > { %991 = vmatpush1.bf16.msra.mxu0 %v3031_v38 }
  0xc4   : > { %992 = vmatprep.subr.bf16.mxu0 %v3036_v39 }
  0xc7   : > { %993 = vmatpush1.bf16.msra.mxu0 %v3034_v40 }
  0xc8   : > { %994 = vmatprep.subr.bf16.mxu0 %v3039_v44 }
  0xcb   : > { %995 = vmatpush1.bf16.msra.mxu0 %v3037_v46 }
  0xcc   : > { %996 = vmatprep.subr.bf16.mxu0 %v3042_v49  ;;  %v790_v49 = vshrl.u32 %v3774_v0, 16 }
  0xcf   : > { %997 = vmatpush1.bf16.msra.mxu0 %v3040_v48 }
  0xd0   : > { %998 = vmatprep.subr.bf16.mxu0 %v3045_v50 }
  0xd3   : > { %999 = vmatpush1.bf16.msra.mxu0 %v3043_v53  ;;  %v3054_v53 = vld [vmem:[#allocation9 + $0x14] ss:$8 sps:$4 sm:$0xff]  }
  0xd4   : > { %1000 = vmatprep.subr.bf16.mxu0 %v3048_v57 }
  0xd7   : > { %1001 = vmatpush1.bf16.msra.mxu0 %v3046_v61  ;;  %v3055_v61 = vld [vmem:[#allocation9 + $0x20] ss:$8 sps:$4 sm:$0xff]  }
  0xd8   : > { %1183 = vmatprep.subr.bf16.mxu0 %v3051_v1 }
 0x16d   : > { %v2852_v29 = vpop.f32.mrb[0].mxu0 }
 0x16e   : > { %v479_v30 = vpop.f32.mrb[1].mxu0 }
 0x16f   : > { %v2853_v31 = vpop.f32.mrb[2].mxu0 }
 0x170   : > { %v495_v32 = vpack.c.bf16 %v2853_v31, %v2852_v29  ;;  %v482_v33 = vpop.f32.mrb[3].mxu0  ;;  %v774_v29 = vshll.u32 %v3774_v0, 16 }
 0x171   : > { %v494_v34 = vpack.c.bf16 %v482_v33, %v479_v30  ;;  %v726_v33 = vld [vmem:[#allocation2 + $0x40] sm:$0x1] }
 0x172   : > { %v776_v37 = vrot.slane %v774_v29, 1  ;;  %v730_v39 = vpack.c.bf16 %v726_v33, %v726_v33  ;;  %v3163_v29 = vld [vmem:[#allocation10 + $0x160] ss:$8 sps:$4 sm:$0xff]   ;;  %v3166_v33 = vld [vmem:[#allocation10 + $0x170] ss:$8 sps:$4 sm:$0xff]  }
 0x173   : > { %2870 = vmatprep.mubr.bf16.mxu1 %v494_v34 }
 0x174   : > { %2871 = vmatmul.mubr.bf16.vlgmr.msra.gmra.mrb[0].mxu1 %v495_v32  ;;  %v777_v48 = vsel %vm765_vm3, %v772_v36, %v776_v37  ;;  %v794_v50 = vshll.u32 %v730_v39, 16  ;;  %v792_v56 = vor.u32 %v790_v49, %v776_v37  ;;  %v3082_v36 = vld [vmem:[#allocation9 + $0xb0] ss:$8 sps:$4 sm:$0xff]   ;;  %v3087_v37 = vld [vmem:[#allocation9 + $0xc4] ss:$8 sps:$4 sm:$0xff]  }
 0x175   : > { %v3090_v39 = vld [vmem:[#allocation9 + $0xd4] ss:$8 sps:$4 sm:$0xff]   ;;  %v3097_v49 = vld [vmem:[#allocation9 + $0x200] ss:$8 sps:$4 sm:$0xff]  }
 0x176   : > { %v796_v57 = vrot.slane %v794_v50, 1 }
 0x178   : > { %v797_v62 = vsel %vm765_vm3, %v792_v56, %v796_v57  ;;  %v3103_v56 = vld [vmem:[#allocation9 + $0x220] ss:$8 sps:$4 sm:$0xff]  }
 0x247   : > { %v2872_v3 = vpop.f32.mrb[0].mxu1 }
 0x248   : > { %v610_v4 = vadd.f32 %v2872_v3, %v2617_v2  ;;  %v601_v5 = vpop.f32.mrb[1].mxu1  ;;  %v3147_v3 = vld [vmem:[#allocation10 + $0x104] ss:$8 sps:$4 sm:$0xff]  }
 0x249   : > { %v602_v6 = vadd.f32 %v2617_v2, %v601_v5  ;;  %v2873_v7 = vpop.f32.mrb[2].mxu1  ;;  %v3150_v5 = vld [vmem:[#allocation10 + $0x114] ss:$8 sps:$4 sm:$0xff]   ;;  %1883 = vmatprep.subr.bf16.mxu1 %v3147_v3  ;;  %v3115_v3 = vld [vmem:[#allocation9 + $0x260] ss:$8 sps:$4 sm:$0xff]  }
 0x24a   : > { %v618_v8 = vmax.f32 %v610_v4, 0.0  ;;  %v613_v9 = vadd.f32 %v2873_v7, %v2617_v2  ;;  %v604_v10 = vpop.f32.mrb[3].mxu1  ;;  %v3058_v4 = vld [vmem:[#allocation9 + $0x30] ss:$8 sps:$4 sm:$0xff]  }
 0x24b   : > { %v616_v11 = vmax.f32 %v602_v6, 0.0  ;;  %v605_v12 = vadd.f32 %v2617_v2, %v604_v10  ;;  %v3145_v2 = vld [vmem:[#allocation10 + $0x100] ss:$8 sps:$4 sm:$0xff]   ;;  %v3063_v6 = vld [vmem:[#allocation9 + $0x44] ss:$8 sps:$4 sm:$0xff]  }
 0x24c   : > { %v619_v14 = vmax.f32 %v613_v9, 0.0  ;;  %v654_v17 = vrot.slane %v618_v8, 7  ;;  %1884 = vmatpush1.bf16.msra.mxu1 %v3145_v2  ;;  %v3148_v7 = vld [vmem:[#allocation10 + $0x110] ss:$8 sps:$4 sm:$0xff]   ;;  %v3153_v8 = vld [vmem:[#allocation10 + $0x124] ss:$8 sps:$4 sm:$0xff]  }
 0x24d   : > { %v647_v15 = vrot.slane %v616_v11, 7  ;;  %v617_v16 = vmax.f32 %v605_v12, 0.0  ;;  %1885 = vmatprep.subr.bf16.mxu1 %v3150_v5  ;;  %v3061_v9 = vld [vmem:[#allocation9 + $0x40] ss:$8 sps:$4 sm:$0xff]   ;;  %v3066_v10 = vld [vmem:[#allocation9 + $0x54] ss:$8 sps:$4 sm:$0xff]  }
 0x24e   : > { %v658_v18 = vrot.slane %v619_v14, 7  ;;  %v3151_v11 = vld [vmem:[#allocation10 + $0x120] ss:$8 sps:$4 sm:$0xff]   ;;  %v3156_v12 = vld [vmem:[#allocation10 + $0x134] ss:$8 sps:$4 sm:$0xff]  }
 0x24f   : > { %671 = vst [vmem:[#allocation2 + $0x8] sm:$0xfe] %v647_v15  ;;  %v650_v20 = vrot.slane %v617_v16, 7  ;;  %v3069_v14 = vld [vmem:[#allocation9 + $0x64] ss:$8 sps:$4 sm:$0xff]  }
 0x250   : > { %v659_v21 = vsel %vm645_vm2, %v654_v17, %v658_v18  ;;  %679 = vst [vmem:[#allocation2 + $0x48] sm:$0x1] %v658_v18  ;;  %1886 = vmatpush1.bf16.msra.mxu1 %v3148_v7  ;;  %v3159_v16 = vld [vmem:[#allocation10 + $0x144] ss:$8 sps:$4 sm:$0xff]   ;;  %v3072_v18 = vld [vmem:[#allocation9 + $0x74] ss:$8 sps:$4 sm:$0xff]  }
 0x251   : > { %v3782_v22 = vsel %vm645_vm2, %v647_v15, %v650_v20  ;;  %v655_v23 = vsel %vm645_vm2, %v650_v20, %v654_v17  ;;  %1887 = vmatprep.subr.bf16.mxu1 %v3153_v8  ;;  %v3154_v15 = vld [vmem:[#allocation10 + $0x130] ss:$8 sps:$4 sm:$0xff]   ;;  %v3067_v17 = vld [vmem:[#allocation9 + $0x60] ss:$8 sps:$4 sm:$0xff]   ;;  %v3162_v20 = vld [vmem:[#allocation10 + $0x154] ss:$8 sps:$4 sm:$0xff]  }
 0x252   : > { %v3785_v24 = vpack.c.bf16 %v659_v21, %v655_v23  ;;  %v3070_v21 = vld [vmem:[#allocation9 + $0x70] ss:$8 sps:$4 sm:$0xff]   ;;  %v3075_v23 = vld [vmem:[#allocation9 + $0x84] ss:$8 sps:$4 sm:$0xff]   ;;  %v3121_v7 = vld [vmem:[#allocation9 + $0x280] ss:$8 sps:$4 sm:$0xff]  }
 0x253   : > { %v3117_v2 = vld [vmem:[#allocation9 + $0x264] ss:$8 sps:$4 sm:$0xff]   ;;  %v3118_v5 = vld [vmem:[#allocation9 + $0x270] ss:$8 sps:$4 sm:$0xff]   ;;  %v3126_v8 = vld [vmem:[#allocation9 + $0x294] ss:$8 sps:$4 sm:$0xff]  }
 0x254   : > { %v786_v31 = vshll.u32 %v3785_v24, 16  ;;  %v798_v45 = vshrl.u32 %v3785_v24, 16  ;;  %1888 = vmatpush1.bf16.msra.mxu1 %v3151_v11  ;;  %v1288_v57 = vrot.slane %v3785_v24, 1  ;;  %v3127_v11 = vld [vmem:[#allocation9 + $0x2a0] ss:$8 sps:$4 sm:$0xff]  }
 0x255   : > { %1889 = vmatprep.subr.bf16.mxu1 %v3156_v12  ;;  %v3132_v12 = vld [vmem:[#allocation9 + $0x2b4] ss:$8 sps:$4 sm:$0xff]  }
 0x256   : > { %v725_v26 = vld [vmem:[#allocation2 + $0x8] sm:$0xfe]  ;;  %v788_v42 = vrot.slane %v786_v31, 1  ;;  %v3076_v31 = vld [vmem:[#allocation9 + $0x90] ss:$8 sps:$4 sm:$0xff]  }
 0x257   : > { %v729_v30 = vpack.c.bf16 %v3782_v22, %v725_v26  ;;  %v727_v32 = vld [vmem:[#allocation2 + $0x48] sm:$0x1]  ;;  %v3165_v26 = vld [vmem:[#allocation10 + $0x164] ss:$8 sps:$4 sm:$0xff]  }
 0x258   : > { %v731_v34 = vpack.c.bf16 %v727_v32, %v727_v32  ;;  %v800_v52 = vor.u32 %v798_v45, %v788_v42  ;;  %v681_v60 = vld [vmem:[#allocation2 + $0x8] sm:$0xff]  ;;  %1890 = vmatpush1.bf16.msra.mxu1 %v3154_v15  ;;  %v3094_v45 = vld [vmem:[#allocation9 + $0xf0] ss:$8 sps:$4 sm:$0xff]  }
 0x259   : > { %v781_v35 = vshll.u32 %v729_v30, 16  ;;  %v779_v40 = vshrl.u32 %v729_v30, 16  ;;  %v689_v1 = vpack.c.bf16 %v3782_v22, %v681_v60  ;;  %1891 = vmatprep.subr.bf16.mxu1 %v3159_v16  ;;  %v3168_v30 = vld [vmem:[#allocation10 + $0x174] ss:$8 sps:$4 sm:$0xff]   ;;  %v3081_v32 = vld [vmem:[#allocation9 + $0xa4] ss:$8 sps:$4 sm:$0xff]  }
 0x25a   : > { %v802_v38 = vshll.u32 %v731_v34, 16  ;;  %v3079_v34 = vld [vmem:[#allocation9 + $0xa0] ss:$8 sps:$4 sm:$0xff]   ;;  %v3106_v60 = vld [vmem:[#allocation9 + $0x230] ss:$8 sps:$4 sm:$0xff]  }
 0x25b   : > { %v783_v41 = vrot.slane %v781_v35, 1  ;;  %v3084_v35 = vld [vmem:[#allocation9 + $0xb4] ss:$8 sps:$4 sm:$0xff]   ;;  %v1237_v50 = vld [vmem:[#allocation2 + $0x8] sm:$0xfc] }
 0x25c   : > { %v804_v46 = vrot.slane %v802_v38, 1  ;;  %1892 = vmatpush1.bf16.msra.mxu1 %v3157_v19  ;;  %v3085_v38 = vld [vmem:[#allocation9 + $0xc0] ss:$8 sps:$4 sm:$0xff]   ;;  %v3138_v16 = vld [vmem:[#allocation9 + $0x2d4] ss:$8 sps:$4 sm:$0xff]  }
 0x25d   : > { %v784_v44 = vor.u32 %v783_v41, %v779_v40  ;;  %1893 = vmatprep.subr.bf16.mxu1 %v3162_v20  ;;  %v3088_v40 = vld [vmem:[#allocation9 + $0xd0] ss:$8 sps:$4 sm:$0xff]   ;;  %v3093_v41 = vld [vmem:[#allocation9 + $0xe4] ss:$8 sps:$4 sm:$0xff]   ;;  %v3133_v15 = vld [vmem:[#allocation9 + $0x2c0] ss:$8 sps:$4 sm:$0xff]  }
 0x25e   : > { %v805_v54 = vsel %vm765_vm3, %v800_v52, %v804_v46  ;;  %v680_v46 = vld [vmem:[#allocation2] sm:$0xff]  ;;  %v1241_v52 = vpack.c.bf16 %v3782_v22, %v1237_v50  ;;  %v3192_v50 = vld [vmem:[#allocation10 + $0x1f4] ss:$8 sps:$4 sm:$0xff]  }
 0x25f   : > { %v789_v51 = vsel %vm765_vm3, %v784_v44, %v788_v42  ;;  %v3091_v42 = vld [vmem:[#allocation9 + $0xe0] ss:$8 sps:$4 sm:$0xff]   ;;  %v3096_v44 = vld [vmem:[#allocation9 + $0xf4] ss:$8 sps:$4 sm:$0xff]  }
 0x260   : > { %1002 = vmatprep.mubr.bf16.mxu0 %v789_v51  ;;  %1894 = vmatpush1.bf16.msra.mxu1 %v3160_v25  ;;  %v3102_v51 = vld [vmem:[#allocation9 + $0x214] ss:$8 sps:$4 sm:$0xff]   ;;  %v1236_v19 = vld [vmem:[#allocation2] sm:$0xfc] }
 0x261   : > { %1003 = vmatmul.mubr.bf16.vlgmr.msra.gmra.mrb[4].mxu0 %v777_v48  ;;  %1895 = vmatprep.subr.bf16.mxu1 %v3165_v26  ;;  %v688_v48 = vpack.c.bf16 %v3770_v58, %v680_v46  ;;  %v3139_v20 = vld [vmem:[#allocation9 + $0x2e0] ss:$8 sps:$4 sm:$0xff]   ;;  %v3144_v25 = vld [vmem:[#allocation9 + $0x2f4] ss:$8 sps:$4 sm:$0xff]   ;;  %v3184_v46 = vld [vmem:[#allocation10 + $0x1d0] ss:$8 sps:$4 sm:$0xff]  }
 0x262   : > { %1184 = vmatpush1.bf16.msra.mxu0 %v3049_v47  ;;  %1012 = vmatprep.mubr.bf16.mxu0 %v805_v54  ;;  %v3099_v47 = vld [vmem:[#allocation9 + $0x204] ss:$8 sps:$4 sm:$0xff]  }
 0x263   : > { %1185 = vmatprep.subr.bf16.mxu0 %v3054_v53  ;;  %v3100_v53 = vld [vmem:[#allocation9 + $0x210] ss:$8 sps:$4 sm:$0xff]   ;;  %v3105_v54 = vld [vmem:[#allocation9 + $0x224] ss:$8 sps:$4 sm:$0xff]  }
 0x264   : > { %1896 = vmatpush1.bf16.msra.mxu1 %v3163_v29  ;;  %v1285_v29 = vrot.slane %v3774_v0, 1 }
 0x265   : > { %1897 = vmatprep.subr.bf16.mxu1 %v3168_v30  ;;  %v1238_v30 = vld [vmem:[#allocation2 + $0x40] sm:$0x3] }
 0x266   : > { %1186 = vmatpush1.bf16.msra.mxu0 %v3052_v55  ;;  %v1287_v55 = vrot.slane %v1241_v52, 1  ;;  %v3813_v52 = vshrl.u32 %v620_v43, 7 }
 0x267   : > { %1187 = vmatprep.subr.bf16.mxu0 %v3057_v59  ;;  %v3108_v59 = vld [vmem:[#allocation9 + $0x234] ss:$8 sps:$4 sm:$0xff]  }
 0x268   : > { %1898 = vmatpush1.bf16.msra.mxu1 %v3166_v33  ;;  %v1289_v22 = vsel %vm1283_vm4, %v1287_v55, %v1288_v57  ;;  %v1242_v33 = vpack.c.bf16 %v1238_v30, %v1238_v30  ;;  %v1527_v55 = vsub.s32 1, %v3813_v52 }
 0x269   : > { %1013 = vmatmul.mubr.bf16.gmra.mrb[8].mxu0 %v797_v62  ;;  %v3109_v62 = vld [vmem:[#allocation9 + $0x240] ss:$8 sps:$4 sm:$0xff]  }
 0x26a   : > { %1188 = vmatpush1.bf16.msra.mxu0 %v3055_v61  ;;  %1215 = vmatprep.mubr.bf16.mxu0 %v689_v1  ;;  %v3111_v61 = vld [vmem:[#allocation9 + $0x244] ss:$8 sps:$4 sm:$0xff]   ;;  %v3112_v1 = vld [vmem:[#allocation9 + $0x250] ss:$8 sps:$4 sm:$0xff]  }
 0x26b   : > { %1189 = vmatprep.subr.bf16.mxu0 %v3060_v63  ;;  %v3114_v63 = vld [vmem:[#allocation9 + $0x254] ss:$8 sps:$4 sm:$0xff]  }
 0x26e   : > { %1190 = vmatpush1.bf16.msra.mxu0 %v3058_v4  ;;  %v3120_v4 = vld [vmem:[#allocation9 + $0x274] ss:$8 sps:$4 sm:$0xff]  }
 0x26f   : > { %1191 = vmatprep.subr.bf16.mxu0 %v3063_v6  ;;  %v3123_v6 = vld [vmem:[#allocation9 + $0x284] ss:$8 sps:$4 sm:$0xff]  }
 0x272   : > { %1192 = vmatpush1.bf16.msra.mxu0 %v3061_v9  ;;  %v3124_v9 = vld [vmem:[#allocation9 + $0x290] ss:$8 sps:$4 sm:$0xff]  }
 0x273   : > { %1193 = vmatprep.subr.bf16.mxu0 %v3066_v10  ;;  %v3129_v10 = vld [vmem:[#allocation9 + $0x2a4] ss:$8 sps:$4 sm:$0xff]  }
 0x276   : > { %1194 = vmatpush1.bf16.msra.mxu0 %v3064_v13  ;;  %v3130_v13 = vld [vmem:[#allocation9 + $0x2b0] ss:$8 sps:$4 sm:$0xff]  }
 0x277   : > { %1195 = vmatprep.subr.bf16.mxu0 %v3069_v14  ;;  %v3135_v14 = vld [vmem:[#allocation9 + $0x2c4] ss:$8 sps:$4 sm:$0xff]  }
 0x27a   : > { %1196 = vmatpush1.bf16.msra.mxu0 %v3067_v17  ;;  %v3136_v17 = vld [vmem:[#allocation9 + $0x2d0] ss:$8 sps:$4 sm:$0xff]  }
 0x27b   : > { %1197 = vmatprep.subr.bf16.mxu0 %v3072_v18  ;;  %v3141_v18 = vld [vmem:[#allocation9 + $0x2e4] ss:$8 sps:$4 sm:$0xff]  }
 0x27e   : > { %1198 = vmatpush1.bf16.msra.mxu0 %v3070_v21  ;;  %v1240_v21 = vpack.c.bf16 %v3770_v58, %v1236_v19 }
 0x27f   : > { %1199 = vmatprep.subr.bf16.mxu0 %v3075_v23  ;;  %v1239_v23 = vld [vmem:[#allocation2 + $0x48] sm:$0x3] }
 0x280   : > { %v1243_v26 = vpack.c.bf16 %v1239_v23, %v1239_v23 }
 0x282   : > { %1200 = vmatpush1.bf16.msra.mxu0 %v3073_v27  ;;  %v3142_v27 = vld [vmem:[#allocation9 + $0x2f0] ss:$8 sps:$4 sm:$0xff]  }
 0x283   : > { %1201 = vmatprep.subr.bf16.mxu0 %v3078_v28  ;;  %v1284_v28 = vrot.slane %v1240_v21, 1 }
 0x286   : > { %1202 = vmatpush1.bf16.msra.mxu0 %v3076_v31  ;;  %v1292_v31 = vrot.slane %v1243_v26, 1 }
 0x287   : > { %1203 = vmatprep.subr.bf16.mxu0 %v3081_v32  ;;  %v1286_v32 = vsel %vm1283_vm4, %v1284_v28, %v1285_v29 }
 0x288   : > { %v1293_v58 = vsel %vm1283_vm4, %v1288_v57, %v1292_v31 }
 0x28a   : > { %1204 = vmatpush1.bf16.msra.mxu0 %v3079_v34  ;;  %v1290_v34 = vrot.slane %v1242_v33, 1 }
 0x28b   : > { %1205 = vmatprep.subr.bf16.mxu0 %v3084_v35 }
 0x28c   : > { %v1291_v35 = vsel %vm1283_vm4, %v1285_v29, %v1290_v34 }
 0x28e   : > { %1206 = vmatpush1.bf16.msra.mxu0 %v3082_v36  ;;  %v3171_v36 = vld [vmem:[#allocation10 + $0x184] ss:$8 sps:$4 sm:$0xff]  }
 0x28f   : > { %1207 = vmatprep.subr.bf16.mxu0 %v3087_v37  ;;  %v3169_v37 = vld [vmem:[#allocation10 + $0x180] ss:$8 sps:$4 sm:$0xff]   ;;  %1899 = vmatprep.subr.bf16.mxu1 %v3171_v36 }
 0x290   : > { %1900 = vmatpush1.bf16.msra.mxu1 %v3169_v37 }
 0x292   : > { %1208 = vmatpush1.bf16.msra.mxu0 %v3085_v38  ;;  %v3172_v38 = vld [vmem:[#allocation10 + $0x190] ss:$8 sps:$4 sm:$0xff]  }
 0x293   : > { %1209 = vmatprep.subr.bf16.mxu0 %v3090_v39  ;;  %v3177_v39 = vld [vmem:[#allocation10 + $0x1a4] ss:$8 sps:$4 sm:$0xff]  }
 0x296   : > { %1210 = vmatpush1.bf16.msra.mxu0 %v3088_v40  ;;  %v3175_v40 = vld [vmem:[#allocation10 + $0x1a0] ss:$8 sps:$4 sm:$0xff]  }
 0x297   : > { %1211 = vmatprep.subr.bf16.mxu0 %v3093_v41  ;;  %v3178_v41 = vld [vmem:[#allocation10 + $0x1b0] ss:$8 sps:$4 sm:$0xff]  }
 0x29a   : > { %1212 = vmatpush1.bf16.msra.mxu0 %v3091_v42  ;;  %v3183_v42 = vld [vmem:[#allocation10 + $0x1c4] ss:$8 sps:$4 sm:$0xff]  }
 0x29b   : > { %1213 = vmatprep.subr.bf16.mxu0 %v3096_v44  ;;  %v3181_v44 = vld [vmem:[#allocation10 + $0x1c0] ss:$8 sps:$4 sm:$0xff]  }
 0x29e   : > { %1214 = vmatpush1.bf16.msra.mxu0 %v3094_v45  ;;  %v3186_v45 = vld [vmem:[#allocation10 + $0x1d4] ss:$8 sps:$4 sm:$0xff]  }
 0x29f   : > { %1458 = vmatprep.subr.bf16.mxu0 %v3099_v47  ;;  %v3189_v47 = vld [vmem:[#allocation10 + $0x1e4] ss:$8 sps:$4 sm:$0xff]  }
 0x2a1   : > { %1216 = vmatmul.mubr.bf16.vlgmr.msra.gmra.mrb[4].mxu0 %v688_v48  ;;  %v3187_v48 = vld [vmem:[#allocation10 + $0x1e0] ss:$8 sps:$4 sm:$0xff]  }
 0x2a2   : > { %1225 = vmatprep.mubr.bf16.mxu0 %v3785_v24  ;;  %1459 = vmatpush1.bf16.msra.mxu0 %v3097_v49  ;;  %v3180_v24 = vld [vmem:[#allocation10 + $0x1b4] ss:$8 sps:$4 sm:$0xff]   ;;  %v3190_v49 = vld [vmem:[#allocation10 + $0x1f0] ss:$8 sps:$4 sm:$0xff]  }
 0x2a3   : > { %1460 = vmatprep.subr.bf16.mxu0 %v3102_v51  ;;  %v3195_v51 = vld [vmem:[#allocation10 + $0x4] ss:$8 sps:$4 sm:$0xff]  }
 0x2a6   : > { %1461 = vmatpush1.bf16.msra.mxu0 %v3100_v53  ;;  %v1523_v53 = vsub.s32 0, %v3813_v52 }
 0x2a7   : > { %1462 = vmatprep.subr.bf16.mxu0 %v3105_v54  ;;  %v1519_v54 = vld [vmem:[%s3928_s6] sm:$0x3] }
 0x2a8   : > { %v1528_v57 = vrot.slane %v1519_v54, %v1527_v55 }
 0x2a9   : > { %1226 = vmatmul.mubr.bf16.gmra.mrb[8].mxu0 %v3774_v0  ;;  %v3174_v0 = vld [vmem:[#allocation10 + $0x194] ss:$8 sps:$4 sm:$0xff]  }
 0x2aa   : > { %1463 = vmatpush1.bf16.msra.mxu0 %v3103_v56  ;;  %1490 = vmatprep.mubr.bf16.mxu0 %v1289_v22  ;;  %v1524_v56 = vrot.slane %v1519_v54, %v1523_v53 }
 0x2ab   : > { %1464 = vmatprep.subr.bf16.mxu0 %v3108_v59  ;;  %1901 = vmatprep.subr.bf16.mxu1 %v3174_v0 }
 0x2ac   : > { %1902 = vmatpush1.bf16.msra.mxu1 %v3172_v38 }
 0x2ad   : > { %1903 = vmatprep.subr.bf16.mxu1 %v3177_v39 }
 0x2ae   : > { %1465 = vmatpush1.bf16.msra.mxu0 %v3106_v60 }
 0x2af   : > { %1466 = vmatprep.subr.bf16.mxu0 %v3111_v61 }
 0x2b0   : > { %1904 = vmatpush1.bf16.msra.mxu1 %v3175_v40 }
 0x2b1   : > { %1905 = vmatprep.subr.bf16.mxu1 %v3180_v24 }
 0x2b2   : > { %1467 = vmatpush1.bf16.msra.mxu0 %v3109_v62 }
 0x2b3   : > { %1468 = vmatprep.subr.bf16.mxu0 %v3114_v63 }
 0x2b4   : > { %1906 = vmatpush1.bf16.msra.mxu1 %v3178_v41 }
 0x2b5   : > { %1907 = vmatprep.subr.bf16.mxu1 %v3183_v42 }
 0x2b6   : > { %1469 = vmatpush1.bf16.msra.mxu0 %v3112_v1 }
 0x2b7   : > { %1470 = vmatprep.subr.bf16.mxu0 %v3117_v2 }
 0x2b8   : > { %1908 = vmatpush1.bf16.msra.mxu1 %v3181_v44 }
 0x2b9   : > { %1909 = vmatprep.subr.bf16.mxu1 %v3186_v45 }
 0x2ba   : > { %1471 = vmatpush1.bf16.msra.mxu0 %v3115_v3 }
 0x2bb   : > { %1472 = vmatprep.subr.bf16.mxu0 %v3120_v4 }
 0x2bc   : > { %1910 = vmatpush1.bf16.msra.mxu1 %v3184_v46 }
 0x2bd   : > { %1911 = vmatprep.subr.bf16.mxu1 %v3189_v47 }
 0x2be   : > { %1473 = vmatpush1.bf16.msra.mxu0 %v3118_v5 }
 0x2bf   : > { %1474 = vmatprep.subr.bf16.mxu0 %v3123_v6 }
 0x2c0   : > { %1912 = vmatpush1.bf16.msra.mxu1 %v3187_v48 }
 0x2c1   : > { %1913 = vmatprep.subr.bf16.mxu1 %v3192_v50  ;;  %v3193_v50 = vld [vmem:[#allocation10] ss:$8 sps:$4 sm:$0xff]  }
 0x2c2   : > { %1475 = vmatpush1.bf16.msra.mxu0 %v3121_v7 }
 0x2c3   : > { %1476 = vmatprep.subr.bf16.mxu0 %v3126_v8 }
 0x2c4   : > { %1914 = vmatpush1.bf16.msra.mxu1 %v3190_v49 }
 0x2c5   : > { %2096 = vmatprep.subr.bf16.mxu1 %v3195_v51 }
 0x2c6   : > { %1477 = vmatpush1.bf16.msra.mxu0 %v3124_v9 }
 0x2c7   : > { %1478 = vmatprep.subr.bf16.mxu0 %v3129_v10 }
 0x2ca   : > { %1479 = vmatpush1.bf16.msra.mxu0 %v3127_v11 }
 0x2cb   : > { %1480 = vmatprep.subr.bf16.mxu0 %v3132_v12 }
 0x2ce   : > { %1481 = vmatpush1.bf16.msra.mxu0 %v3130_v13 }
 0x2cf   : > { %1482 = vmatprep.subr.bf16.mxu0 %v3135_v14 }
 0x2d2   : > { %1483 = vmatpush1.bf16.msra.mxu0 %v3133_v15 }
 0x2d3   : > { %1484 = vmatprep.subr.bf16.mxu0 %v3138_v16 }
 0x2d6   : > { %1485 = vmatpush1.bf16.msra.mxu0 %v3136_v17 }
 0x2d7   : > { %1486 = vmatprep.subr.bf16.mxu0 %v3141_v18 }
 0x2da   : > { %1487 = vmatpush1.bf16.msra.mxu0 %v3139_v20 }
 0x2db   : > { %1488 = vmatprep.subr.bf16.mxu0 %v3144_v25 }
 0x2de   : > { %1489 = vmatpush1.bf16.msra.mxu0 %v3142_v27 }
 0x2e1   : > { %1491 = vmatmul.mubr.bf16.vlgmr.msra.gmra.mrb[4].mxu0 %v1286_v32 }
 0x2e2   : > { %1500 = vmatprep.mubr.bf16.mxu0 %v1293_v58 }
 0x2e9   : > { %1501 = vmatmul.mubr.bf16.gmra.mrb[8].mxu0 %v1291_v35 }
 0x3b4   : > { %v1492_v59 = vpop.f32.mrb[4].mxu0 }
 0x3b5   : > { %v1531_v22 = vadd.f32 %v1524_v56, %v1492_v59  ;;  %v1494_v60 = vpop.f32.mrb[5].mxu0 }
 0x3b6   : > { %v1532_v61 = vadd.f32 %v1528_v57, %v1494_v60  ;;  %v1496_v43 = vpop.f32.mrb[6].mxu0 }
 0x3b7   : > { %v1539_v62 = vmax.f32 %v1531_v22, 0.0  ;;  %v1533_v63 = vadd.f32 %v1524_v56, %v1496_v43  ;;  %v1498_v1 = vpop.f32.mrb[7].mxu0 }
 0x3b8   : > { %v1540_v2 = vmax.f32 %v1532_v61, 0.0  ;;  %v1534_v3 = vadd.f32 %v1528_v57, %v1498_v1  ;;  %v3201_v1 = vld [vmem:[#allocation10 + $0x24] ss:$8 sps:$4 sm:$0xff]  }
 0x3b9   : > { %v1560_v4 = vrot.slane %v1539_v62, 7  ;;  %v1541_v5 = vmax.f32 %v1533_v63, 0.0  ;;  %v3196_v63 = vld [vmem:[#allocation10 + $0x10] ss:$8 sps:$4 sm:$0xff]  }
 0x3ba   : > { %v1561_v6 = vrot.slane %v1540_v2, 7  ;;  %v1542_v7 = vmax.f32 %v1534_v3, 0.0 }
 0x3bb   : > { %1584 = vst [vmem:[#allocation3] sm:$0xfe] %v1560_v4  ;;  %v1562_v8 = vrot.slane %v1541_v5, 7 }
 0x3bc   : > { %1585 = vst [vmem:[#allocation3 + $0x8] sm:$0xfe] %v1561_v6  ;;  %v1564_v9 = vrot.slane %v1542_v7, 7  ;;  %v1502_v10 = vpop.f32.mrb[8].mxu0 }
 0x3bd   : > { %v3825_v11 = vsel %vm645_vm2, %v1560_v4, %v1562_v8  ;;  %v1535_v12 = vadd.f32 %v1524_v56, %v1502_v10  ;;  %v1504_v13 = vpop.f32.mrb[9].mxu0  ;;  %v3204_v10 = vld [vmem:[#allocation10 + $0x34] ss:$8 sps:$4 sm:$0xff]  }
 0x3be   : > { %v3828_v14 = vsel %vm645_vm2, %v1561_v6, %v1564_v9  ;;  %v1536_v15 = vadd.f32 %v1528_v57, %v1504_v13  ;;  %v1506_v16 = vpop.f32.mrb[10].mxu0 }
 0x3bf   : > { %v1543_v17 = vmax.f32 %v1535_v12, 0.0  ;;  %v1537_v18 = vadd.f32 %v1524_v56, %v1506_v16  ;;  %v1508_v19 = vpop.f32.mrb[11].mxu0  ;;  %v3207_v16 = vld [vmem:[#allocation10 + $0x44] ss:$8 sps:$4 sm:$0xff]  }
 0x3c0   : > { %v1544_v20 = vmax.f32 %v1536_v15, 0.0  ;;  %v1538_v21 = vadd.f32 %v1528_v57, %v1508_v19  ;;  %v3198_v57 = vld [vmem:[#allocation10 + $0x14] ss:$8 sps:$4 sm:$0xff]   ;;  %v3202_v15 = vld [vmem:[#allocation10 + $0x30] ss:$8 sps:$4 sm:$0xff]  }
 0x3c1   : > { %v1566_v23 = vrot.slane %v1543_v17, 7  ;;  %v1545_v25 = vmax.f32 %v1537_v18, 0.0  ;;  %v3205_v17 = vld [vmem:[#allocation10 + $0x40] ss:$8 sps:$4 sm:$0xff]   ;;  %v3210_v18 = vld [vmem:[#allocation10 + $0x54] ss:$8 sps:$4 sm:$0xff]  }
 0x3c2   : > { %v1568_v26 = vrot.slane %v1544_v20, 7  ;;  %v1546_v27 = vmax.f32 %v1538_v21, 0.0  ;;  %v1638_v28 = vld [vmem:[#allocation3] sm:$0xfe]  ;;  %v3213_v20 = vld [vmem:[#allocation10 + $0x64] ss:$8 sps:$4 sm:$0xff]  }
 0x3c3   : > { %v1567_v29 = vsel %vm645_vm2, %v1562_v8, %v1566_v23  ;;  %v1570_v30 = vrot.slane %v1545_v25, 7  ;;  %v1639_v31 = vld [vmem:[#allocation3 + $0x8] sm:$0xfe]  ;;  %v1642_v32 = vpack.c.bf16 %v3825_v11, %v1638_v28  ;;  %v3199_v8 = vld [vmem:[#allocation10 + $0x20] ss:$8 sps:$4 sm:$0xff]  }
 0x3c4   : > { %v1569_v33 = vsel %vm645_vm2, %v1564_v9, %v1568_v26  ;;  %v1572_v58 = vrot.slane %v1546_v27, 7  ;;  %v1643_v34 = vpack.c.bf16 %v3828_v14, %v1639_v31  ;;  %v1595_v6 = vld [vmem:[#allocation3 + $0x8] sm:$0xff]  ;;  %v3211_v21 = vld [vmem:[#allocation10 + $0x60] ss:$8 sps:$4 sm:$0xff]  }
 0x3c5   : > { %v1571_v35 = vsel %vm645_vm2, %v1566_v23, %v1570_v30  ;;  %1592 = vst [vmem:[#allocation3 + $0x40] sm:$0x1] %v1570_v30  ;;  %v1682_v36 = vshll.u32 %v1642_v32, 16  ;;  %v1680_v42 = vshrl.u32 %v1642_v32, 16  ;;  %v1603_v13 = vpack.c.bf16 %v3828_v14, %v1595_v6  ;;  %v3208_v19 = vld [vmem:[#allocation10 + $0x50] ss:$8 sps:$4 sm:$0xff]  }
 0x3c6   : > { %v1573_v37 = vsel %vm645_vm2, %v1568_v26, %v1572_v58  ;;  %1593 = vst [vmem:[#allocation3 + $0x48] sm:$0x1] %v1572_v58  ;;  %v1694_v0 = vshll.u32 %v1643_v34, 16  ;;  %v3836_v38 = vpack.c.bf16 %v1571_v35, %v1567_v29  ;;  %v1692_v24 = vshrl.u32 %v1643_v34, 16  ;;  %v3216_v23 = vld [vmem:[#allocation10 + $0x74] ss:$8 sps:$4 sm:$0xff]  }
 0x3c7   : > { %v3838_v39 = vpack.c.bf16 %v1573_v37, %v1569_v33  ;;  %v1684_v40 = vrot.slane %v1682_v36, 1  ;;  %v3214_v25 = vld [vmem:[#allocation10 + $0x70] ss:$8 sps:$4 sm:$0xff]   ;;  %v3219_v26 = vld [vmem:[#allocation10 + $0x84] ss:$8 sps:$4 sm:$0xff]  }
 0x3c8   : > { %v1696_v41 = vrot.slane %v1694_v0, 1  ;;  %v1687_v44 = vshll.u32 %v3836_v38, 16  ;;  %v1703_v4 = vshrl.u32 %v3836_v38, 16  ;;  %v3217_v27 = vld [vmem:[#allocation10 + $0x80] ss:$8 sps:$4 sm:$0xff]  }
 0x3c9   : > { %v1699_v45 = vshll.u32 %v3838_v39, 16  ;;  %v1685_v47 = vor.u32 %v1684_v40, %v1680_v42  ;;  %v1711_v43 = vshrl.u32 %v3838_v39, 16  ;;  %v3222_v28 = vld [vmem:[#allocation10 + $0x94] ss:$8 sps:$4 sm:$0xff]   ;;  %v3220_v29 = vld [vmem:[#allocation10 + $0x90] ss:$8 sps:$4 sm:$0xff]  }
 0x3ca   : > { %v1697_v46 = vor.u32 %v1696_v41, %v1692_v24  ;;  %v1689_v48 = vrot.slane %v1687_v44, 1  ;;  %v3225_v30 = vld [vmem:[#allocation10 + $0xa4] ss:$8 sps:$4 sm:$0xff]   ;;  %v3223_v31 = vld [vmem:[#allocation10 + $0xa0] ss:$8 sps:$4 sm:$0xff]   ;;  %v1594_v42 = vld [vmem:[#allocation3] sm:$0xff] }
 0x3cb   : > { %v1701_v49 = vrot.slane %v1699_v45, 1  ;;  %v3228_v32 = vld [vmem:[#allocation10 + $0xb4] ss:$8 sps:$4 sm:$0xff]   ;;  %v3226_v33 = vld [vmem:[#allocation10 + $0xb0] ss:$8 sps:$4 sm:$0xff]   ;;  %v1602_v45 = vpack.c.bf16 %v3825_v11, %v1594_v42 }
 0x3cc   : > { %v1640_v51 = vld [vmem:[#allocation3 + $0x40] sm:$0x1]  ;;  %v1690_v22 = vsel %vm765_vm3, %v1685_v47, %v1689_v48  ;;  %v1705_v9 = vor.u32 %v1703_v4, %v1689_v48  ;;  %v3231_v58 = vld [vmem:[#allocation10 + $0xc4] ss:$8 sps:$4 sm:$0xff]   ;;  %v3229_v34 = vld [vmem:[#allocation10 + $0xc0] ss:$8 sps:$4 sm:$0xff]  }
 0x3cd   : > { %v1702_v54 = vsel %vm765_vm3, %v1697_v46, %v1701_v49  ;;  %v1641_v56 = vld [vmem:[#allocation3 + $0x48] sm:$0x1]  ;;  %v1644_v59 = vpack.c.bf16 %v1640_v51, %v1640_v51  ;;  %v1713_v2 = vor.u32 %v1711_v43, %v1701_v49  ;;  %v3234_v35 = vld [vmem:[#allocation10 + $0xd4] ss:$8 sps:$4 sm:$0xff]   ;;  %v3237_v37 = vld [vmem:[#allocation10 + $0xe4] ss:$8 sps:$4 sm:$0xff]  }
 0x3ce   : > { %1915 = vmatprep.mubr.bf16.mxu1 %v1702_v54  ;;  %v1645_v60 = vpack.c.bf16 %v1641_v56, %v1641_v56  ;;  %v3232_v36 = vld [vmem:[#allocation10 + $0xd0] ss:$8 sps:$4 sm:$0xff]   ;;  %v3235_v0 = vld [vmem:[#allocation10 + $0xe0] ss:$8 sps:$4 sm:$0xff]   ;;  %v3240_v40 = vld [vmem:[#allocation10 + $0xf4] ss:$8 sps:$4 sm:$0xff]  }
 0x3cf   : > { %1916 = vmatmul.mubr.bf16.vlgmr.msra.gmra.mrb[4].mxu1 %v1690_v22  ;;  %v1707_v61 = vshll.u32 %v1644_v59, 16  ;;  %v3238_v24 = vld [vmem:[#allocation10 + $0xf0] ss:$8 sps:$4 sm:$0xff]   ;;  %v3243_v41 = vld [vmem:[#allocation10 + $0x204] ss:$8 sps:$4 sm:$0xff]   ;;  %v2200_v51 = vrot.slane %v3838_v39, 1 }
 0x3d0   : > { %2097 = vmatpush1.bf16.msra.mxu1 %v3193_v50  ;;  %v1715_v62 = vshll.u32 %v1645_v60, 16  ;;  %v3241_v44 = vld [vmem:[#allocation10 + $0x200] ss:$8 sps:$4 sm:$0xff]   ;;  %v3246_v46 = vld [vmem:[#allocation10 + $0x214] ss:$8 sps:$4 sm:$0xff]  }
 0x3d1   : > { %2098 = vmatprep.subr.bf16.mxu1 %v3198_v57  ;;  %v1709_v5 = vrot.slane %v1707_v61, 1  ;;  %v2150_v47 = vld [vmem:[#allocation3 + $0x8] sm:$0xfc]  ;;  %v3249_v49 = vld [vmem:[#allocation10 + $0x224] ss:$8 sps:$4 sm:$0xff]  }
 0x3d2   : > { %v1717_v3 = vrot.slane %v1715_v62, 1  ;;  %v3244_v48 = vld [vmem:[#allocation10 + $0x210] ss:$8 sps:$4 sm:$0xff]   ;;  %v2154_v50 = vpack.c.bf16 %v3828_v14, %v2150_v47  ;;  %v3247_v54 = vld [vmem:[#allocation10 + $0x220] ss:$8 sps:$4 sm:$0xff]  }
 0x3d3   : > { %v1710_v12 = vsel %vm765_vm3, %v1705_v9, %v1709_v5  ;;  %v3252_v57 = vld [vmem:[#allocation10 + $0x234] ss:$8 sps:$4 sm:$0xff]   ;;  %v3250_v22 = vld [vmem:[#allocation10 + $0x230] ss:$8 sps:$4 sm:$0xff]   ;;  %v3255_v60 = vld [vmem:[#allocation10 + $0x244] ss:$8 sps:$4 sm:$0xff]  }
 0x3d4   : > { %v1718_v7 = vsel %vm765_vm3, %v1713_v2, %v1717_v3  ;;  %2099 = vmatpush1.bf16.msra.mxu1 %v3196_v63  ;;  %v2199_v56 = vrot.slane %v2154_v50, 1  ;;  %v3253_v14 = vld [vmem:[#allocation10 + $0x240] ss:$8 sps:$4 sm:$0xff]   ;;  %v3258_v61 = vld [vmem:[#allocation10 + $0x254] ss:$8 sps:$4 sm:$0xff]  }
 0x3d5   : > { %1925 = vmatprep.mubr.bf16.mxu1 %v1718_v7  ;;  %2100 = vmatprep.subr.bf16.mxu1 %v3201_v1  ;;  %v3256_v43 = vld [vmem:[#allocation10 + $0x250] ss:$8 sps:$4 sm:$0xff]   ;;  %v3261_v62 = vld [vmem:[#allocation10 + $0x264] ss:$8 sps:$4 sm:$0xff]   ;;  %v3259_v63 = vld [vmem:[#allocation10 + $0x260] ss:$8 sps:$4 sm:$0xff]  }
 0x3d6   : > { %v2201_v59 = vsel %vm1283_vm4, %v2199_v56, %v2200_v51  ;;  %v3264_v1 = vld [vmem:[#allocation10 + $0x274] ss:$8 sps:$4 sm:$0xff]   ;;  %v3262_v2 = vld [vmem:[#allocation10 + $0x270] ss:$8 sps:$4 sm:$0xff]   ;;  %v3267_v3 = vld [vmem:[#allocation10 + $0x284] ss:$8 sps:$4 sm:$0xff]  }
 0x3d7   : > { %1926 = vmatmul.mubr.bf16.gmra.mrb[8].mxu1 %v1710_v12  ;;  %v3265_v4 = vld [vmem:[#allocation10 + $0x280] ss:$8 sps:$4 sm:$0xff]   ;;  %v3270_v5 = vld [vmem:[#allocation10 + $0x294] ss:$8 sps:$4 sm:$0xff]   ;;  %v3268_v6 = vld [vmem:[#allocation10 + $0x290] ss:$8 sps:$4 sm:$0xff]  }
 0x3d8   : > { %2101 = vmatpush1.bf16.msra.mxu1 %v3199_v8  ;;  %2128 = vmatprep.mubr.bf16.mxu1 %v1603_v13  ;;  %v3273_v7 = vld [vmem:[#allocation10 + $0x2a4] ss:$8 sps:$4 sm:$0xff]   ;;  %v3271_v8 = vld [vmem:[#allocation10 + $0x2a0] ss:$8 sps:$4 sm:$0xff]   ;;  %v3276_v9 = vld [vmem:[#allocation10 + $0x2b4] ss:$8 sps:$4 sm:$0xff]  }
 0x3d9   : > { %2102 = vmatprep.subr.bf16.mxu1 %v3204_v10  ;;  %v3274_v10 = vld [vmem:[#allocation10 + $0x2b0] ss:$8 sps:$4 sm:$0xff]   ;;  %v3279_v12 = vld [vmem:[#allocation10 + $0x2c4] ss:$8 sps:$4 sm:$0xff]   ;;  %v3277_v13 = vld [vmem:[#allocation10 + $0x2c0] ss:$8 sps:$4 sm:$0xff]  }
 0x3dc   : > { %2103 = vmatpush1.bf16.msra.mxu1 %v3202_v15  ;;  %v3282_v15 = vld [vmem:[#allocation10 + $0x2d4] ss:$8 sps:$4 sm:$0xff]  }
 0x3dd   : > { %2104 = vmatprep.subr.bf16.mxu1 %v3207_v16  ;;  %v3280_v16 = vld [vmem:[#allocation10 + $0x2d0] ss:$8 sps:$4 sm:$0xff]  }
 0x3e0   : > { %2105 = vmatpush1.bf16.msra.mxu1 %v3205_v17  ;;  %v3285_v17 = vld [vmem:[#allocation10 + $0x2e4] ss:$8 sps:$4 sm:$0xff]  }
 0x3e1   : > { %2106 = vmatprep.subr.bf16.mxu1 %v3210_v18  ;;  %v3283_v18 = vld [vmem:[#allocation10 + $0x2e0] ss:$8 sps:$4 sm:$0xff]  }
 0x3e4   : > { %2107 = vmatpush1.bf16.msra.mxu1 %v3208_v19  ;;  %v2152_v19 = vld [vmem:[#allocation3 + $0x48] sm:$0x3] }
 0x3e5   : > { %2108 = vmatprep.subr.bf16.mxu1 %v3213_v20  ;;  %v3288_v20 = vld [vmem:[#allocation10 + $0x2f4] ss:$8 sps:$4 sm:$0xff]  }
 0x3e8   : > { %2109 = vmatpush1.bf16.msra.mxu1 %v3211_v21  ;;  %v2149_v21 = vld [vmem:[#allocation3] sm:$0xfc] }
 0x3e9   : > { %2110 = vmatprep.subr.bf16.mxu1 %v3216_v23  ;;  %v2156_v23 = vpack.c.bf16 %v2152_v19, %v2152_v19 }
 0x3ec   : > { %2111 = vmatpush1.bf16.msra.mxu1 %v3214_v25  ;;  %v3286_v25 = vld [vmem:[#allocation10 + $0x2f0] ss:$8 sps:$4 sm:$0xff]  }
 0x3ed   : > { %2112 = vmatprep.subr.bf16.mxu1 %v3219_v26  ;;  %v2153_v26 = vpack.c.bf16 %v3825_v11, %v2149_v21 }
 0x3f0   : > { %2113 = vmatpush1.bf16.msra.mxu1 %v3217_v27  ;;  %v2197_v27 = vrot.slane %v3836_v38, 1 }
 0x3f1   : > { %2114 = vmatprep.subr.bf16.mxu1 %v3222_v28  ;;  %v2204_v28 = vrot.slane %v2156_v23, 1 }
 0x3f4   : > { %2115 = vmatpush1.bf16.msra.mxu1 %v3220_v29  ;;  %v2151_v29 = vld [vmem:[#allocation3 + $0x40] sm:$0x3] }
 0x3f5   : > { %2116 = vmatprep.subr.bf16.mxu1 %v3225_v30  ;;  %v2196_v30 = vrot.slane %v2153_v26, 1 }
 0x3f8   : > { %2117 = vmatpush1.bf16.msra.mxu1 %v3223_v31  ;;  %v2198_v31 = vsel %vm1283_vm4, %v2196_v30, %v2197_v27 }
 0x3f9   : > { %2118 = vmatprep.subr.bf16.mxu1 %v3228_v32  ;;  %v2155_v32 = vpack.c.bf16 %v2151_v29, %v2151_v29 }
 0x3fc   : > { %2119 = vmatpush1.bf16.msra.mxu1 %v3226_v33  ;;  %v2205_v33 = vsel %vm1283_vm4, %v2200_v51, %v2204_v28 }
 0x3fd   : > { %2120 = vmatprep.subr.bf16.mxu1 %v3231_v58  ;;  %v2202_v58 = vrot.slane %v2155_v32, 1 }
 0x3ff   : > { %v2203_v11 = vsel %vm1283_vm4, %v2197_v27, %v2202_v58 }
 0x400   : > { %2121 = vmatpush1.bf16.msra.mxu1 %v3229_v34 }
 0x401   : > { %2122 = vmatprep.subr.bf16.mxu1 %v3234_v35 }
 0x404   : > { %2123 = vmatpush1.bf16.msra.mxu1 %v3232_v36 }
 0x405   : > { %2124 = vmatprep.subr.bf16.mxu1 %v3237_v37 }
 0x408   : > { %2125 = vmatpush1.bf16.msra.mxu1 %v3235_v0 }
 0x409   : > { %2126 = vmatprep.subr.bf16.mxu1 %v3240_v40 }
 0x40c   : > { %2127 = vmatpush1.bf16.msra.mxu1 %v3238_v24 }
 0x40d   : > { %2370 = vmatprep.subr.bf16.mxu1 %v3243_v41 }
 0x40f   : > { %2129 = vmatmul.mubr.bf16.vlgmr.msra.gmra.mrb[4].mxu1 %v1602_v45 }
 0x410   : > { %2138 = vmatprep.mubr.bf16.mxu1 %v3838_v39  ;;  %2371 = vmatpush1.bf16.msra.mxu1 %v3241_v44 }
 0x411   : > { %2372 = vmatprep.subr.bf16.mxu1 %v3246_v46 }
 0x414   : > { %2373 = vmatpush1.bf16.msra.mxu1 %v3244_v48 }
 0x415   : > { %2374 = vmatprep.subr.bf16.mxu1 %v3249_v49 }
 0x417   : > { %2139 = vmatmul.mubr.bf16.gmra.mrb[8].mxu1 %v3836_v38  ;;  %v2431_v38 = vld [vmem:[%s3930_s8] sm:$0x3] }
 0x418   : > { %2375 = vmatpush1.bf16.msra.mxu1 %v3247_v54  ;;  %2402 = vmatprep.mubr.bf16.mxu1 %v2201_v59  ;;  %v2436_v34 = vrot.slane %v2431_v38, %v1523_v53  ;;  %v2440_v35 = vrot.slane %v2431_v38, %v1527_v55 }
 0x419   : > { %2376 = vmatprep.subr.bf16.mxu1 %v3252_v57 }
 0x41c   : > { %2377 = vmatpush1.bf16.msra.mxu1 %v3250_v22 }
 0x41d   : > { %2378 = vmatprep.subr.bf16.mxu1 %v3255_v60 }
 0x420   : > { %2379 = vmatpush1.bf16.msra.mxu1 %v3253_v14 }
 0x421   : > { %2380 = vmatprep.subr.bf16.mxu1 %v3258_v61 }
 0x424   : > { %2381 = vmatpush1.bf16.msra.mxu1 %v3256_v43 }
 0x425   : > { %2382 = vmatprep.subr.bf16.mxu1 %v3261_v62 }
 0x428   : > { %2383 = vmatpush1.bf16.msra.mxu1 %v3259_v63 }
 0x429   : > { %2384 = vmatprep.subr.bf16.mxu1 %v3264_v1 }
 0x42c   : > { %2385 = vmatpush1.bf16.msra.mxu1 %v3262_v2 }
 0x42d   : > { %2386 = vmatprep.subr.bf16.mxu1 %v3267_v3 }
 0x430   : > { %2387 = vmatpush1.bf16.msra.mxu1 %v3265_v4 }
 0x431   : > { %2388 = vmatprep.subr.bf16.mxu1 %v3270_v5 }
 0x434   : > { %2389 = vmatpush1.bf16.msra.mxu1 %v3268_v6 }
 0x435   : > { %2390 = vmatprep.subr.bf16.mxu1 %v3273_v7 }
 0x438   : > { %2391 = vmatpush1.bf16.msra.mxu1 %v3271_v8 }
 0x439   : > { %2392 = vmatprep.subr.bf16.mxu1 %v3276_v9 }
 0x43c   : > { %2393 = vmatpush1.bf16.msra.mxu1 %v3274_v10 }
 0x43d   : > { %2394 = vmatprep.subr.bf16.mxu1 %v3279_v12 }
 0x440   : > { %2395 = vmatpush1.bf16.msra.mxu1 %v3277_v13 }
 0x441   : > { %2396 = vmatprep.subr.bf16.mxu1 %v3282_v15 }
 0x444   : > { %2397 = vmatpush1.bf16.msra.mxu1 %v3280_v16 }
 0x445   : > { %2398 = vmatprep.subr.bf16.mxu1 %v3285_v17 }
 0x448   : > { %2399 = vmatpush1.bf16.msra.mxu1 %v3283_v18 }
 0x449   : > { %2400 = vmatprep.subr.bf16.mxu1 %v3288_v20 }
 0x44c   : > { %2401 = vmatpush1.bf16.msra.mxu1 %v3286_v25 }
 0x44f   : > { %2403 = vmatmul.mubr.bf16.vlgmr.msra.gmra.mrb[4].mxu1 %v2198_v31 }
 0x450   : > { %2412 = vmatprep.mubr.bf16.mxu1 %v2205_v33 }
 0x457   : > { %2413 = vmatmul.mubr.bf16.gmra.mrb[8].mxu1 %v2203_v11 }
 0x522   : > { %v2404_v36 = vpop.f32.mrb[4].mxu1 }
 0x523   : > { %v2443_v39 = vadd.f32 %v2436_v34, %v2404_v36  ;;  %v2406_v37 = vpop.f32.mrb[5].mxu1 }
 0x524   : > { %v2444_v0 = vadd.f32 %v2440_v35, %v2406_v37  ;;  %v2408_v40 = vpop.f32.mrb[6].mxu1 }
 0x525   : > { %v2451_v24 = vmax.f32 %v2443_v39, 0.0  ;;  %v2445_v41 = vadd.f32 %v2436_v34, %v2408_v40  ;;  %v2410_v42 = vpop.f32.mrb[7].mxu1 }
 0x526   : > { %v2452_v44 = vmax.f32 %v2444_v0, 0.0  ;;  %v2446_v45 = vadd.f32 %v2440_v35, %v2410_v42 }
 0x527   : > { %2459 = vst [vmem:[%s409_s24] sm:$0xff] %v2451_v24  ;;  %v2453_v46 = vmax.f32 %v2445_v41, 0.0 }
 0x528   : > { %2460 = vst [vmem:[%s409_s24 + $0x8] sm:$0xff] %v2452_v44  ;;  %v2454_v53 = vmax.f32 %v2446_v45, 0.0 }
 0x529   : > { %2461 = vst [vmem:[%s409_s24 + $0x10] sm:$0xff] %v2453_v46 }
 0x52a   : > { %2462 = vst [vmem:[%s409_s24 + $0x18] sm:$0xff] %v2454_v53  ;;  %v2414_v52 = vpop.f32.mrb[8].mxu1 }
 0x52b   : > { %v2447_v55 = vadd.f32 %v2436_v34, %v2414_v52  ;;  %v2416_v47 = vpop.f32.mrb[9].mxu1 }
 0x52c   : > { %v2448_v48 = vadd.f32 %v2440_v35, %v2416_v47  ;;  %v2418_v49 = vpop.f32.mrb[10].mxu1 }
 0x52d   : > { %v2455_v50 = vmax.f32 %v2447_v55, 0.0  ;;  %v2449_v51 = vadd.f32 %v2436_v34, %v2418_v49  ;;  %v2420_v54 = vpop.f32.mrb[11].mxu1 }
 0x52e   : > { %v2456_v56 = vmax.f32 %v2448_v48, 0.0  ;;  %v2450_v57 = vadd.f32 %v2440_v35, %v2420_v54 }
 0x52f   : > { %2463 = vst [vmem:[%s409_s24 + $0x20] sm:$0xff] %v2455_v50  ;;  %v2457_v59 = vmax.f32 %v2449_v51, 0.0 }
 0x530   : > { %2464 = vst [vmem:[%s409_s24 + $0x28] sm:$0xff] %v2456_v56  ;;  %v2458_v22 = vmax.f32 %v2450_v57, 0.0 }
 0x531   : > { %2465 = vst [vmem:[%s409_s24 + $0x30] sm:$0xff] %v2457_v59 }
 0x532   : > { %2466 = vst [vmem:[%s409_s24 + $0x38] sm:$0xff] %v2458_v22 }
 0x533   : > { %3416 = shalt.err (!%p3413_p9)
}
 0x534   : > { %s3417_s9 = scalar_lea.hbm %s3878_s14, 1024  ;;  %s3421_s17 = scalar_lea.hbm %s3961_s16, 2048 }
 0x535   : > { %p3418_p0 = scmp.ne.s32.totalorder %s3878_s14, %s3417_s9  ;;  %p3422_p13 = scmp.lt.u32.totalorder %s3878_s14, %s3961_s16 }
 0x536   : > { %p3423_p6 = scmp.lt.u32.totalorder %s3421_s17, %s3417_s9  ;;  %p3425_p3 = scmp.lt.u32.totalorder %s3417_s9, %s3878_s14 }
 0x537   : > { %p3419_p11 = pnand %p3418_p0, %p3686_p5 }
 0x538   : > { %p3424_p10 = por %p3423_p6, %p3422_p13 }
 0x539   : > { %p3420_p8 = pneg %p3419_p11 }
 0x53a   : > { %p3426_p7 = por %p3425_p3, %p3424_p10 }
 0x53c   : > { %p3427_p12 = pnand %p3426_p7, %p3420_p8 }
 0x53e   : > { %3430 = shalt.err (!%p3427_p12)
}
 0x53f   : > { %s3489_s19 = smov 256   ;;  %s3490_s22 = smov 16  }
 0x540   : > { %2920 = dma.vmem_to_hbm [thread:$0]  (%p3686_p5), %s3873_s27, 1024, %s3878_s14, %s2468_s13, %s3489_s19, %s3489_s19, %s3490_s22  }
 0x541 PF: > { %s3962_s18 = sld [smem:[#allocation17_spill]]  ;;  %s3963_s30 = sld [smem:[#allocation18_spill]] }
 0x542   : > { %p3965_p2 = scmp.ge.s32.totalorder %s3477_s12, 2 }
 0x547   : > { %s2496_s21 = sand.u32 1, %s3962_s18   ;;  %p3964_p1 = scmp.ne.s32.totalorder %s3963_s30, 0 }
 0x548   : > { %s2497_s23 = scalar_lea.sflag [#allocation6], %s2496_s21 }
 0x549   : > { %p2937_p4 = pnand %p3965_p2, %p3964_p1 }
 0x54b   : > { %3460 = dma.done.wait (!%p2937_p4), %s2497_s23, 1024  }
 0x54c   : > { %3462 = vsyncadd (!%p2937_p4), %s2497_s23, 4294966272  ;;  %p24_p9 = scmp.ge.s32.totalorder %s3654_s29, 4   ;;  %s3966_s30 = smov %s3469_s10 }
 0x54d   : > { %s3967_s10 = smov %s3473_s11  ;;  %s3968_s11 = smov %s3682_s20 }
 0x54e   : > { %s3969_s12 = smov %s3654_s29  ;;  %26 = sbr.rel (!%p24_p9) target bundleno = 10 (0xa), region = 122 }
 0x555   :  { %2502 = vsyncpa [#allocation5], 1 }
 0x556   :  { %2504 = vsyncpa [#allocation5 + $0x1], 1 }
 0x557   :  { %2505 = vsyncpa [#allocation8], 1 }
 0x558   :  { %2506 = vsyncpa [#allocation11], 1 }
 0x559   :  { %2507 = vsyncpa [#allocation6], 1 }
 0x55a   :  { %2509 = vsyncpa [#allocation6 + $0x1], 1 }

</bundles_post_ra>
